<compile_context>
chip_gen: v6e
topology: v6e:2x2x1
jax: 0.10.0
libtpu: 0.0.40
codegen_flags: <defaults>
</compile_context>

<pallas_src>
import functools

import jax
import jax.numpy as jnp
import numpy as np
from jax import lax
from jax.experimental import pallas as pl
from jax.experimental.pallas import tpu as pltpu


FEAT_PAD = 128  # lane-dense feature padding


# --------------------------------------------------------------------------
# Fused Pallas kernel: all hconv layers + batch norms in one invocation.
# --------------------------------------------------------------------------
def _fused_hetero_conv_kernel(a_ref, h_ref, ws_ref, wn_ref, b_ref,
                              ws_last_ref, wn_last_ref, b_last_ref, o_ref,
                              *, n_act_layers, n_etypes, n_nodes, eps):
    """a_ref:       (E*N, N)   bf16  row-normalized adjacency, stacked over etypes
       h_ref:       (N, Fp)    f32   lane-padded input features
       ws_ref:      (La*E, Fp, Fp) bf16  W_self  for ReLU layers
       wn_ref:      (La*E, Fp, Fp) bf16  W_neigh for ReLU layers
       b_ref:       (La*E, 1, Fp)  f32   b_self + b_neigh for ReLU layers
       ws_last_ref: (Fp, Fp)   bf16  sum_e W_self  of last layer
       wn_last_ref: (E, Fp, Fp) bf16 W_neigh of last layer
       b_last_ref:  (1, Fp)    f32   sum_e (b_self + b_neigh) of last layer
       o_ref:       (N, Fp)    f32   lane-padded output features
    """
    N = n_nodes
    a = a_ref[...]                                    # (E*N, N) bf16, reused every layer
    h = h_ref[...]                                    # (N, Fp)  f32

    for l in range(n_act_layers + 1):                 # unrolled layer loop
        h_bf = h.astype(jnp.bfloat16)

        # Mean aggregation for ALL edge types in one matmul: (E*N,N)@(N,Fp).
        agg_all = jnp.dot(a, h_bf, preferred_element_type=jnp.float32)
        agg_all = agg_all.astype(jnp.bfloat16)        # operand of the neigh matmul

        if l < n_act_layers:
            # Layers with per-etype SAGEConv activation (ReLU).
            acc = None
            for e in range(n_etypes):                 # unrolled (E = 2)
                idx = l * n_etypes + e
                agg_e = agg_all[e * N:(e + 1) * N]    # sublane-aligned static slice
                y = (jnp.dot(h_bf, ws_ref[idx], preferred_element_type=jnp.float32)
                     + jnp.dot(agg_e, wn_ref[idx], preferred_element_type=jnp.float32)
                     + b_ref[idx])
                y = jnp.maximum(y, 0.0)               # SAGEConv activation (per etype)
                acc = y if acc is None else acc + y   # HeteroGraphConv aggregate='sum'
        else:
            # Last layer: no per-etype activation -> self path / bias pre-summed.
            acc = (jnp.dot(h_bf, ws_last_ref[...], preferred_element_type=jnp.float32)
                   + b_last_ref[...])
            for e in range(n_etypes):
                agg_e = agg_all[e * N:(e + 1) * N]
                acc = acc + jnp.dot(agg_e, wn_last_ref[e],
                                    preferred_element_type=jnp.float32)

        # BatchNorm1d, training-mode batch statistics, gamma=1 / beta=0, f32.
        mean = jnp.mean(acc, axis=0, keepdims=True)
        var = jnp.mean(jnp.square(acc - mean), axis=0, keepdims=True)  # biased var
        h = (acc - mean) * lax.rsqrt(var + eps)

    o_ref[...] = h


# --------------------------------------------------------------------------
# One-time parameter fusion / lane padding (hoisted out of the forward)
# --------------------------------------------------------------------------
def build_fused_params(layer_params, n_etypes, feat_pad=FEAT_PAD):
    ws_act, wn_act, b_act = [], [], []
    for lp in layer_params[:-1]:
        fin, fout = lp["w_self"].shape[1], lp["w_self"].shape[2]
        ws = jnp.zeros((n_etypes, feat_pad, feat_pad), jnp.float32
                       ).at[:, :fin, :fout].set(lp["w_self"])
        wn = jnp.zeros((n_etypes, feat_pad, feat_pad), jnp.float32
                       ).at[:, :fin, :fout].set(lp["w_neigh"])
        b = jnp.zeros((n_etypes, 1, feat_pad), jnp.float32
                      ).at[:, :, :fout].set(lp["b_self"] + lp["b_neigh"])
        ws_act.append(ws); wn_act.append(wn); b_act.append(b)
    ws_act = jnp.concatenate(ws_act, axis=0).astype(jnp.bfloat16)  # (La*E, Fp, Fp)
    wn_act = jnp.concatenate(wn_act, axis=0).astype(jnp.bfloat16)  # (La*E, Fp, Fp)
    b_act = jnp.concatenate(b_act, axis=0)                          # (La*E, 1, Fp) f32

    lp = layer_params[-1]
    fin, fout = lp["w_self"].shape[1], lp["w_self"].shape[2]
    ws_last = jnp.zeros((feat_pad, feat_pad), jnp.float32
                        ).at[:fin, :fout].set(jnp.sum(lp["w_self"], axis=0)
                        ).astype(jnp.bfloat16)                      # (Fp, Fp)
    wn_last = jnp.zeros((n_etypes, feat_pad, feat_pad), jnp.float32
                        ).at[:, :fin, :fout].set(lp["w_neigh"]
                        ).astype(jnp.bfloat16)                      # (E, Fp, Fp)
    b_last = jnp.zeros((1, feat_pad), jnp.float32
                       ).at[:, :fout].set(jnp.sum(lp["b_self"] + lp["b_neigh"], axis=0))
    return ws_act, wn_act, b_act, ws_last, wn_last, b_last


# --------------------------------------------------------------------------
# Forward wrapper (jit this; all padding/fusion happens outside)
# --------------------------------------------------------------------------
def hetero_conv_forward(h_pad, a_stacked, ws_act, wn_act, b_act,
                        ws_last, wn_last, b_last, *,
                        n_etypes, n_nodes, eps=1e-5):
    Fp = h_pad.shape[1]
    n_act_layers = ws_act.shape[0] // n_etypes
    n_total = n_act_layers + 1

    kernel = functools.partial(_fused_hetero_conv_kernel,
                               n_act_layers=n_act_layers,
                               n_etypes=n_etypes,
                               n_nodes=n_nodes,
                               eps=eps)

    flops = (n_total * 2 * n_etypes * n_nodes * n_nodes * Fp           # aggregation
             + n_act_layers * n_etypes * 4 * n_nodes * Fp * Fp         # self+neigh (act layers)
             + (1 + n_etypes) * 2 * n_nodes * Fp * Fp)                 # last layer
    bytes_accessed = sum(int(x.size) * x.dtype.itemsize
                         for x in (a_stacked, h_pad, ws_act, wn_act, b_act,
                                   ws_last, wn_last, b_last)) + n_nodes * Fp * 4

    out = pl.pallas_call(
        kernel,
        out_shape=jax.ShapeDtypeStruct((n_nodes, Fp), jnp.float32),
        in_specs=[
            pl.BlockSpec(a_stacked.shape, lambda: (0, 0)),           # A (stacked, bf16)
            pl.BlockSpec(h_pad.shape, lambda: (0, 0)),               # H (padded, f32)
            pl.BlockSpec(ws_act.shape, lambda: (0, 0, 0)),           # W_self  (ReLU layers)
            pl.BlockSpec(wn_act.shape, lambda: (0, 0, 0)),           # W_neigh (ReLU layers)
            pl.BlockSpec(b_act.shape, lambda: (0, 0, 0)),            # biases  (ReLU layers)
            pl.BlockSpec(ws_last.shape, lambda: (0, 0)),             # sum_e W_self (last)
            pl.BlockSpec(wn_last.shape, lambda: (0, 0, 0)),          # W_neigh (last)
            pl.BlockSpec(b_last.shape, lambda: (0, 0)),              # summed bias (last)
        ],
        out_specs=pl.BlockSpec((n_nodes, Fp), lambda: (0, 0)),
        compiler_params=pltpu.CompilerParams(vmem_limit_bytes=32 * 1024 * 1024),
        cost_estimate=pl.CostEstimate(flops=flops,
                                      transcendentals=n_total * Fp,
                                      bytes_accessed=bytes_accessed),
    )(a_stacked, h_pad, ws_act, wn_act, b_act, ws_last, wn_last, b_last)
    return out


# --------------------------------------------------------------------------
# Pure-JAX f32 reference (faithful to the PyTorch module's forward)
# --------------------------------------------------------------------------
def reference_forward(h, a_norm, layer_params, eps=1e-5):
    n_total = len(layer_params)
    for i, lp in enumerate(layer_params):
        acc = jnp.zeros((h.shape[0], lp["w_self"].shape[2]), jnp.float32)
        for e in range(a_norm.shape[0]):
            agg = a_norm[e] @ h
            y = h @ lp["w_self"][e] + lp["b_self"][e, 0]
            y = y + agg @ lp["w_neigh"][e] + lp["b_neigh"][e, 0]
            if i < n_total - 1:
                y = jnp.maximum(y, 0.0)
            acc = acc + y
        h = acc
        mean = jnp.mean(h, axis=0, keepdims=True)
        var = jnp.mean(jnp.square(h - mean), axis=0, keepdims=True)
        h = (h - mean) / jnp.sqrt(var + eps)
    return h


# --------------------------------------------------------------------------
# Main
# --------------------------------------------------------------------------
if __name__ == "__main__":
    N = 128         # number of nodes (>=128 so every MXU pass has full M rows)
    IN_FEATS = 8
    HID_FEATS = 32
    N_LAYERS = 2    # -> n_layers + 1 = 3 hconv layers, 3 batch norms
    E = 2           # number of edge types

    key = jax.random.PRNGKey(0)
    k_feat, k_adj, k_w = jax.random.split(key, 3)

    # Node features [N, IN_FEATS]
    h0 = jax.random.normal(k_feat, (N, IN_FEATS), dtype=jnp.float32)

    # Random adjacency per edge type, row-normalized for mean aggregation.
    adj = jax.random.bernoulli(k_adj, p=0.3, shape=(E, N, N)).astype(jnp.float32)
    deg = jnp.sum(adj, axis=-1, keepdims=True)
    a_norm = adj / jnp.maximum(deg, 1.0)

    # Deterministic per-layer, per-etype SAGEConv parameters.
    dims = [(IN_FEATS, HID_FEATS)] + [(HID_FEATS, HID_FEATS)] * N_LAYERS
    layer_params = []
    wkeys = jax.random.split(k_w, len(dims))
    for (fin, fout), lk in zip(dims, wkeys):
        k1, k2, k3, k4 = jax.random.split(lk, 4)
        layer_params.append({
            "w_self":  0.1 * jax.random.normal(k1, (E, fin, fout), jnp.float32),
            "b_self":  0.1 * jax.random.normal(k2, (E, 1, fout), jnp.float32),
            "w_neigh": 0.1 * jax.random.normal(k3, (E, fin, fout), jnp.float32),
            "b_neigh": 0.1 * jax.random.normal(k4, (E, 1, fout), jnp.float32),
        })

    # ---- one-time host-side prep (hoisted out of the jitted forward) ----
    fused = build_fused_params(layer_params, E)
    a_stacked = a_norm.reshape(E * N, N).astype(jnp.bfloat16)   # sublane-stacked A
    h_pad = jnp.zeros((N, FEAT_PAD), jnp.float32).at[:, :IN_FEATS].set(h0)

    fwd = jax.jit(functools.partial(hetero_conv_forward,
                                    n_etypes=E, n_nodes=N, eps=1e-5))

    out_pad = fwd(h_pad, a_stacked, *fused)
    out_pad = jax.block_until_ready(out_pad)
    out = np.asarray(out_pad)[:, :HID_FEATS]

    # Reference is full f32; the kernel uses bf16 matmul operands (f32 accum),
    # so allow ~bf16-level tolerance (values are BN-normalized, std ~1).
    ref = np.asarray(reference_forward(h0, a_norm, layer_params))
    np.testing.assert_allclose(out, ref, rtol=3e-2, atol=3e-2)
    print("KERNEL_OK")
</pallas_src>

<mosaic_0001>
module attributes {stable_mosaic.version = 11 : i64} {
  func.func @_fused_hetero_conv_kernel(%arg0: memref<256x128xbf16, #tpu.memory_space<vmem>>, %arg1: memref<128x128xf32, #tpu.memory_space<vmem>>, %arg2: memref<4x128x128xbf16, #tpu.memory_space<vmem>>, %arg3: memref<4x128x128xbf16, #tpu.memory_space<vmem>>, %arg4: memref<4x1x128xf32, #tpu.memory_space<vmem>>, %arg5: memref<128x128xbf16, #tpu.memory_space<vmem>>, %arg6: memref<2x128x128xbf16, #tpu.memory_space<vmem>>, %arg7: memref<1x128xf32, #tpu.memory_space<vmem>>, %arg8: memref<128x128xf32, #tpu.memory_space<vmem>>) attributes {dimension_semantics = [], scalar_prefetch = 0 : i64, scratch_operands = 0 : i64, tpu.core_type = #tpu.core_type<tc>} {
    %c0 = arith.constant 0 : index
    %c0_0 = arith.constant 0 : index
    %0 = vector.load %arg0[%c0, %c0_0] : memref<256x128xbf16, #tpu.memory_space<vmem>>, vector<256x128xbf16>
    %c0_1 = arith.constant 0 : index
    %c0_2 = arith.constant 0 : index
    %1 = vector.load %arg1[%c0_1, %c0_2] : memref<128x128xf32, #tpu.memory_space<vmem>>, vector<128x128xf32>
    %2 = arith.truncf %1 : vector<128x128xf32> to vector<128x128xbf16>
    %cst = arith.constant dense<0.000000e+00> : vector<256x128xf32>
    %3 = tpu.matmul %0, %2, %cst {dimension_numbers = #tpu.dot_dimension_numbers<[1], [0], [0], [1], [0, 0, 1, 1], [], []>} : vector<256x128xbf16>, vector<128x128xbf16>, vector<256x128xf32> -> vector<256x128xf32>
    %4 = arith.truncf %3 : vector<256x128xf32> to vector<256x128xbf16>
    %5 = vector.extract_strided_slice %4 {offsets = [0, 0], sizes = [128, 128], strides = [1, 1]} : vector<256x128xbf16> to vector<128x128xbf16>
    %c0_3 = arith.constant 0 : index
    %c0_4 = arith.constant 0 : index
    %c0_5 = arith.constant 0 : index
    %6 = vector.load %arg2[%c0_3, %c0_4, %c0_5] : memref<4x128x128xbf16, #tpu.memory_space<vmem>>, vector<1x128x128xbf16>
    %7 = vector.shape_cast %6 : vector<1x128x128xbf16> to vector<128x128xbf16>
    %cst_6 = arith.constant dense<0.000000e+00> : vector<128x128xf32>
    %8 = tpu.matmul %2, %7, %cst_6 {dimension_numbers = #tpu.dot_dimension_numbers<[1], [0], [0], [1], [0, 0, 1, 1], [], []>} : vector<128x128xbf16>, vector<128x128xbf16>, vector<128x128xf32> -> vector<128x128xf32>
    %c0_7 = arith.constant 0 : index
    %c0_8 = arith.constant 0 : index
    %c0_9 = arith.constant 0 : index
    %9 = vector.load %arg3[%c0_7, %c0_8, %c0_9] : memref<4x128x128xbf16, #tpu.memory_space<vmem>>, vector<1x128x128xbf16>
    %10 = vector.shape_cast %9 : vector<1x128x128xbf16> to vector<128x128xbf16>
    %cst_10 = arith.constant dense<0.000000e+00> : vector<128x128xf32>
    %11 = tpu.matmul %5, %10, %cst_10 {dimension_numbers = #tpu.dot_dimension_numbers<[1], [0], [0], [1], [0, 0, 1, 1], [], []>} : vector<128x128xbf16>, vector<128x128xbf16>, vector<128x128xf32> -> vector<128x128xf32>
    %12 = arith.addf %8, %11 : vector<128x128xf32>
    %c0_11 = arith.constant 0 : index
    %c0_12 = arith.constant 0 : index
    %c0_13 = arith.constant 0 : index
    %13 = vector.load %arg4[%c0_11, %c0_12, %c0_13] : memref<4x1x128xf32, #tpu.memory_space<vmem>>, vector<1x1x128xf32>
    %14 = vector.shape_cast %13 : vector<1x1x128xf32> to vector<1x128xf32>
    %15 = vector.broadcast %14 : vector<1x128xf32> to vector<128x128xf32>
    %16 = arith.addf %12, %15 : vector<128x128xf32>
    %cst_14 = arith.constant 0.000000e+00 : f32
    %17 = vector.broadcast %cst_14 : f32 to vector<128x128xf32>
    %18 = arith.maximumf %16, %17 : vector<128x128xf32>
    %19 = vector.extract_strided_slice %4 {offsets = [128, 0], sizes = [128, 128], strides = [1, 1]} : vector<256x128xbf16> to vector<128x128xbf16>
    %c1 = arith.constant 1 : index
    %c0_15 = arith.constant 0 : index
    %c0_16 = arith.constant 0 : index
    %20 = vector.load %arg2[%c1, %c0_15, %c0_16] : memref<4x128x128xbf16, #tpu.memory_space<vmem>>, vector<1x128x128xbf16>
    %21 = vector.shape_cast %20 : vector<1x128x128xbf16> to vector<128x128xbf16>
    %cst_17 = arith.constant dense<0.000000e+00> : vector<128x128xf32>
    %22 = tpu.matmul %2, %21, %cst_17 {dimension_numbers = #tpu.dot_dimension_numbers<[1], [0], [0], [1], [0, 0, 1, 1], [], []>} : vector<128x128xbf16>, vector<128x128xbf16>, vector<128x128xf32> -> vector<128x128xf32>
    %c1_18 = arith.constant 1 : index
    %c0_19 = arith.constant 0 : index
    %c0_20 = arith.constant 0 : index
    %23 = vector.load %arg3[%c1_18, %c0_19, %c0_20] : memref<4x128x128xbf16, #tpu.memory_space<vmem>>, vector<1x128x128xbf16>
    %24 = vector.shape_cast %23 : vector<1x128x128xbf16> to vector<128x128xbf16>
    %cst_21 = arith.constant dense<0.000000e+00> : vector<128x128xf32>
    %25 = tpu.matmul %19, %24, %cst_21 {dimension_numbers = #tpu.dot_dimension_numbers<[1], [0], [0], [1], [0, 0, 1, 1], [], []>} : vector<128x128xbf16>, vector<128x128xbf16>, vector<128x128xf32> -> vector<128x128xf32>
    %26 = arith.addf %22, %25 : vector<128x128xf32>
    %c1_22 = arith.constant 1 : index
    %c0_23 = arith.constant 0 : index
    %c0_24 = arith.constant 0 : index
    %27 = vector.load %arg4[%c1_22, %c0_23, %c0_24] : memref<4x1x128xf32, #tpu.memory_space<vmem>>, vector<1x1x128xf32>
    %28 = vector.shape_cast %27 : vector<1x1x128xf32> to vector<1x128xf32>
    %29 = vector.broadcast %28 : vector<1x128xf32> to vector<128x128xf32>
    %30 = arith.addf %26, %29 : vector<128x128xf32>
    %cst_25 = arith.constant 0.000000e+00 : f32
    %31 = vector.broadcast %cst_25 : f32 to vector<128x128xf32>
    %32 = arith.maximumf %30, %31 : vector<128x128xf32>
    %33 = arith.addf %18, %32 : vector<128x128xf32>
    %cst_26 = arith.constant dense<0.000000e+00> : vector<128xf32>
    %34 = vector.multi_reduction <add>, %33, %cst_26 [0] : vector<128x128xf32> to vector<128xf32>
    %35 = vector.shape_cast %34 : vector<128xf32> to vector<1x128xf32>
    %cst_27 = arith.constant 1.280000e+02 : f32
    %36 = vector.broadcast %cst_27 : f32 to vector<1x128xf32>
    %37 = arith.divf %35, %36 : vector<1x128xf32>
    %38 = vector.broadcast %37 : vector<1x128xf32> to vector<128x128xf32>
    %39 = arith.subf %33, %38 : vector<128x128xf32>
    %40 = arith.mulf %39, %39 : vector<128x128xf32>
    %cst_28 = arith.constant dense<0.000000e+00> : vector<128xf32>
    %41 = vector.multi_reduction <add>, %40, %cst_28 [0] : vector<128x128xf32> to vector<128xf32>
    %42 = vector.shape_cast %41 : vector<128xf32> to vector<1x128xf32>
    %cst_29 = arith.constant 1.280000e+02 : f32
    %43 = vector.broadcast %cst_29 : f32 to vector<1x128xf32>
    %44 = arith.divf %42, %43 : vector<1x128xf32>
    %45 = vector.broadcast %37 : vector<1x128xf32> to vector<128x128xf32>
    %46 = arith.subf %33, %45 : vector<128x128xf32>
    %cst_30 = arith.constant 9.99999974E-6 : f32
    %47 = vector.broadcast %cst_30 : f32 to vector<1x128xf32>
    %48 = arith.addf %44, %47 : vector<1x128xf32>
    %49 = math.rsqrt %48 : vector<1x128xf32>
    %50 = vector.broadcast %49 : vector<1x128xf32> to vector<128x128xf32>
    %51 = arith.mulf %46, %50 : vector<128x128xf32>
    %52 = arith.truncf %51 : vector<128x128xf32> to vector<128x128xbf16>
    %cst_31 = arith.constant dense<0.000000e+00> : vector<256x128xf32>
    %53 = tpu.matmul %0, %52, %cst_31 {dimension_numbers = #tpu.dot_dimension_numbers<[1], [0], [0], [1], [0, 0, 1, 1], [], []>} : vector<256x128xbf16>, vector<128x128xbf16>, vector<256x128xf32> -> vector<256x128xf32>
    %54 = arith.truncf %53 : vector<256x128xf32> to vector<256x128xbf16>
    %55 = vector.extract_strided_slice %54 {offsets = [0, 0], sizes = [128, 128], strides = [1, 1]} : vector<256x128xbf16> to vector<128x128xbf16>
    %c2 = arith.constant 2 : index
    %c0_32 = arith.constant 0 : index
    %c0_33 = arith.constant 0 : index
    %56 = vector.load %arg2[%c2, %c0_32, %c0_33] : memref<4x128x128xbf16, #tpu.memory_space<vmem>>, vector<1x128x128xbf16>
    %57 = vector.shape_cast %56 : vector<1x128x128xbf16> to vector<128x128xbf16>
    %cst_34 = arith.constant dense<0.000000e+00> : vector<128x128xf32>
    %58 = tpu.matmul %52, %57, %cst_34 {dimension_numbers = #tpu.dot_dimension_numbers<[1], [0], [0], [1], [0, 0, 1, 1], [], []>} : vector<128x128xbf16>, vector<128x128xbf16>, vector<128x128xf32> -> vector<128x128xf32>
    %c2_35 = arith.constant 2 : index
    %c0_36 = arith.constant 0 : index
    %c0_37 = arith.constant 0 : index
    %59 = vector.load %arg3[%c2_35, %c0_36, %c0_37] : memref<4x128x128xbf16, #tpu.memory_space<vmem>>, vector<1x128x128xbf16>
    %60 = vector.shape_cast %59 : vector<1x128x128xbf16> to vector<128x128xbf16>
    %cst_38 = arith.constant dense<0.000000e+00> : vector<128x128xf32>
    %61 = tpu.matmul %55, %60, %cst_38 {dimension_numbers = #tpu.dot_dimension_numbers<[1], [0], [0], [1], [0, 0, 1, 1], [], []>} : vector<128x128xbf16>, vector<128x128xbf16>, vector<128x128xf32> -> vector<128x128xf32>
    %62 = arith.addf %58, %61 : vector<128x128xf32>
    %c2_39 = arith.constant 2 : index
    %c0_40 = arith.constant 0 : index
    %c0_41 = arith.constant 0 : index
    %63 = vector.load %arg4[%c2_39, %c0_40, %c0_41] : memref<4x1x128xf32, #tpu.memory_space<vmem>>, vector<1x1x128xf32>
    %64 = vector.shape_cast %63 : vector<1x1x128xf32> to vector<1x128xf32>
    %65 = vector.broadcast %64 : vector<1x128xf32> to vector<128x128xf32>
    %66 = arith.addf %62, %65 : vector<128x128xf32>
    %cst_42 = arith.constant 0.000000e+00 : f32
    %67 = vector.broadcast %cst_42 : f32 to vector<128x128xf32>
    %68 = arith.maximumf %66, %67 : vector<128x128xf32>
    %69 = vector.extract_strided_slice %54 {offsets = [128, 0], sizes = [128, 128], strides = [1, 1]} : vector<256x128xbf16> to vector<128x128xbf16>
    %c3 = arith.constant 3 : index
    %c0_43 = arith.constant 0 : index
    %c0_44 = arith.constant 0 : index
    %70 = vector.load %arg2[%c3, %c0_43, %c0_44] : memref<4x128x128xbf16, #tpu.memory_space<vmem>>, vector<1x128x128xbf16>
    %71 = vector.shape_cast %70 : vector<1x128x128xbf16> to vector<128x128xbf16>
    %cst_45 = arith.constant dense<0.000000e+00> : vector<128x128xf32>
    %72 = tpu.matmul %52, %71, %cst_45 {dimension_numbers = #tpu.dot_dimension_numbers<[1], [0], [0], [1], [0, 0, 1, 1], [], []>} : vector<128x128xbf16>, vector<128x128xbf16>, vector<128x128xf32> -> vector<128x128xf32>
    %c3_46 = arith.constant 3 : index
    %c0_47 = arith.constant 0 : index
    %c0_48 = arith.constant 0 : index
    %73 = vector.load %arg3[%c3_46, %c0_47, %c0_48] : memref<4x128x128xbf16, #tpu.memory_space<vmem>>, vector<1x128x128xbf16>
    %74 = vector.shape_cast %73 : vector<1x128x128xbf16> to vector<128x128xbf16>
    %cst_49 = arith.constant dense<0.000000e+00> : vector<128x128xf32>
    %75 = tpu.matmul %69, %74, %cst_49 {dimension_numbers = #tpu.dot_dimension_numbers<[1], [0], [0], [1], [0, 0, 1, 1], [], []>} : vector<128x128xbf16>, vector<128x128xbf16>, vector<128x128xf32> -> vector<128x128xf32>
    %76 = arith.addf %72, %75 : vector<128x128xf32>
    %c3_50 = arith.constant 3 : index
    %c0_51 = arith.constant 0 : index
    %c0_52 = arith.constant 0 : index
    %77 = vector.load %arg4[%c3_50, %c0_51, %c0_52] : memref<4x1x128xf32, #tpu.memory_space<vmem>>, vector<1x1x128xf32>
    %78 = vector.shape_cast %77 : vector<1x1x128xf32> to vector<1x128xf32>
    %79 = vector.broadcast %78 : vector<1x128xf32> to vector<128x128xf32>
    %80 = arith.addf %76, %79 : vector<128x128xf32>
    %cst_53 = arith.constant 0.000000e+00 : f32
    %81 = vector.broadcast %cst_53 : f32 to vector<128x128xf32>
    %82 = arith.maximumf %80, %81 : vector<128x128xf32>
    %83 = arith.addf %68, %82 : vector<128x128xf32>
    %cst_54 = arith.constant dense<0.000000e+00> : vector<128xf32>
    %84 = vector.multi_reduction <add>, %83, %cst_54 [0] : vector<128x128xf32> to vector<128xf32>
    %85 = vector.shape_cast %84 : vector<128xf32> to vector<1x128xf32>
    %cst_55 = arith.constant 1.280000e+02 : f32
    %86 = vector.broadcast %cst_55 : f32 to vector<1x128xf32>
    %87 = arith.divf %85, %86 : vector<1x128xf32>
    %88 = vector.broadcast %87 : vector<1x128xf32> to vector<128x128xf32>
    %89 = arith.subf %83, %88 : vector<128x128xf32>
    %90 = arith.mulf %89, %89 : vector<128x128xf32>
    %cst_56 = arith.constant dense<0.000000e+00> : vector<128xf32>
    %91 = vector.multi_reduction <add>, %90, %cst_56 [0] : vector<128x128xf32> to vector<128xf32>
    %92 = vector.shape_cast %91 : vector<128xf32> to vector<1x128xf32>
    %cst_57 = arith.constant 1.280000e+02 : f32
    %93 = vector.broadcast %cst_57 : f32 to vector<1x128xf32>
    %94 = arith.divf %92, %93 : vector<1x128xf32>
    %95 = vector.broadcast %87 : vector<1x128xf32> to vector<128x128xf32>
    %96 = arith.subf %83, %95 : vector<128x128xf32>
    %cst_58 = arith.constant 9.99999974E-6 : f32
    %97 = vector.broadcast %cst_58 : f32 to vector<1x128xf32>
    %98 = arith.addf %94, %97 : vector<1x128xf32>
    %99 = math.rsqrt %98 : vector<1x128xf32>
    %100 = vector.broadcast %99 : vector<1x128xf32> to vector<128x128xf32>
    %101 = arith.mulf %96, %100 : vector<128x128xf32>
    %102 = arith.truncf %101 : vector<128x128xf32> to vector<128x128xbf16>
    %cst_59 = arith.constant dense<0.000000e+00> : vector<256x128xf32>
    %103 = tpu.matmul %0, %102, %cst_59 {dimension_numbers = #tpu.dot_dimension_numbers<[1], [0], [0], [1], [0, 0, 1, 1], [], []>} : vector<256x128xbf16>, vector<128x128xbf16>, vector<256x128xf32> -> vector<256x128xf32>
    %104 = arith.truncf %103 : vector<256x128xf32> to vector<256x128xbf16>
    %c0_60 = arith.constant 0 : index
    %c0_61 = arith.constant 0 : index
    %105 = vector.load %arg5[%c0_60, %c0_61] : memref<128x128xbf16, #tpu.memory_space<vmem>>, vector<128x128xbf16>
    %cst_62 = arith.constant dense<0.000000e+00> : vector<128x128xf32>
    %106 = tpu.matmul %102, %105, %cst_62 {dimension_numbers = #tpu.dot_dimension_numbers<[1], [0], [0], [1], [0, 0, 1, 1], [], []>} : vector<128x128xbf16>, vector<128x128xbf16>, vector<128x128xf32> -> vector<128x128xf32>
    %c0_63 = arith.constant 0 : index
    %c0_64 = arith.constant 0 : index
    %107 = vector.load %arg7[%c0_63, %c0_64] : memref<1x128xf32, #tpu.memory_space<vmem>>, vector<1x128xf32>
    %108 = vector.broadcast %107 : vector<1x128xf32> to vector<128x128xf32>
    %109 = arith.addf %106, %108 : vector<128x128xf32>
    %110 = vector.extract_strided_slice %104 {offsets = [0, 0], sizes = [128, 128], strides = [1, 1]} : vector<256x128xbf16> to vector<128x128xbf16>
    %c0_65 = arith.constant 0 : index
    %c0_66 = arith.constant 0 : index
    %c0_67 = arith.constant 0 : index
    %111 = vector.load %arg6[%c0_65, %c0_66, %c0_67] : memref<2x128x128xbf16, #tpu.memory_space<vmem>>, vector<1x128x128xbf16>
    %112 = vector.shape_cast %111 : vector<1x128x128xbf16> to vector<128x128xbf16>
    %cst_68 = arith.constant dense<0.000000e+00> : vector<128x128xf32>
    %113 = tpu.matmul %110, %112, %cst_68 {dimension_numbers = #tpu.dot_dimension_numbers<[1], [0], [0], [1], [0, 0, 1, 1], [], []>} : vector<128x128xbf16>, vector<128x128xbf16>, vector<128x128xf32> -> vector<128x128xf32>
    %114 = arith.addf %109, %113 : vector<128x128xf32>
    %115 = vector.extract_strided_slice %104 {offsets = [128, 0], sizes = [128, 128], strides = [1, 1]} : vector<256x128xbf16> to vector<128x128xbf16>
    %c1_69 = arith.constant 1 : index
    %c0_70 = arith.constant 0 : index
    %c0_71 = arith.constant 0 : index
    %116 = vector.load %arg6[%c1_69, %c0_70, %c0_71] : memref<2x128x128xbf16, #tpu.memory_space<vmem>>, vector<1x128x128xbf16>
    %117 = vector.shape_cast %116 : vector<1x128x128xbf16> to vector<128x128xbf16>
    %cst_72 = arith.constant dense<0.000000e+00> : vector<128x128xf32>
    %118 = tpu.matmul %115, %117, %cst_72 {dimension_numbers = #tpu.dot_dimension_numbers<[1], [0], [0], [1], [0, 0, 1, 1], [], []>} : vector<128x128xbf16>, vector<128x128xbf16>, vector<128x128xf32> -> vector<128x128xf32>
    %119 = arith.addf %114, %118 : vector<128x128xf32>
    %cst_73 = arith.constant dense<0.000000e+00> : vector<128xf32>
    %120 = vector.multi_reduction <add>, %119, %cst_73 [0] : vector<128x128xf32> to vector<128xf32>
    %121 = vector.shape_cast %120 : vector<128xf32> to vector<1x128xf32>
    %cst_74 = arith.constant 1.280000e+02 : f32
    %122 = vector.broadcast %cst_74 : f32 to vector<1x128xf32>
    %123 = arith.divf %121, %122 : vector<1x128xf32>
    %124 = vector.broadcast %123 : vector<1x128xf32> to vector<128x128xf32>
    %125 = arith.subf %119, %124 : vector<128x128xf32>
    %126 = arith.mulf %125, %125 : vector<128x128xf32>
    %cst_75 = arith.constant dense<0.000000e+00> : vector<128xf32>
    %127 = vector.multi_reduction <add>, %126, %cst_75 [0] : vector<128x128xf32> to vector<128xf32>
    %128 = vector.shape_cast %127 : vector<128xf32> to vector<1x128xf32>
    %cst_76 = arith.constant 1.280000e+02 : f32
    %129 = vector.broadcast %cst_76 : f32 to vector<1x128xf32>
    %130 = arith.divf %128, %129 : vector<1x128xf32>
    %131 = vector.broadcast %123 : vector<1x128xf32> to vector<128x128xf32>
    %132 = arith.subf %119, %131 : vector<128x128xf32>
    %cst_77 = arith.constant 9.99999974E-6 : f32
    %133 = vector.broadcast %cst_77 : f32 to vector<1x128xf32>
    %134 = arith.addf %130, %133 : vector<1x128xf32>
    %135 = math.rsqrt %134 : vector<1x128xf32>
    %136 = vector.broadcast %135 : vector<1x128xf32> to vector<128x128xf32>
    %137 = arith.mulf %132, %136 : vector<128x128xf32>
    %c0_78 = arith.constant 0 : index
    %c0_79 = arith.constant 0 : index
    %138 = vector.load %arg8[%c0_78, %c0_79] : memref<128x128xf32, #tpu.memory_space<vmem>>, vector<128x128xf32>
    tpu.vector_store %arg8[%c0_78, %c0_79], %137 {strides = array<i32>} : memref<128x128xf32, #tpu.memory_space<vmem>>, vector<128x128xf32>,
    return
  }
}

</mosaic_0001>

<bundles_post_ra>
// kernel: hetero_conv_forward.1
= control target key start
LH: loop header
LB: loop body
LE: loop exit
PB: predicated region body
PF: predicated region fallthrough
CT: control target
= control target key end

     0   :  { %13 = vsyncpa [#allocation3], 0  ;;  %s5021_s0 = inlined_call_operand.hbm [shape: bf16[256,128], index: 0, kind: input, shape index: {}]   ;;  %s5022_s1 = inlined_call_operand.hbm [shape: f32[128,128], index: 1, kind: input, shape index: {}]   ;;  %s5023_s2 = inlined_call_operand.hbm [shape: bf16[4,128,128], index: 2, kind: input, shape index: {}]   ;;  %s5024_s3 = inlined_call_operand.hbm [shape: bf16[4,128,128], index: 3, kind: input, shape index: {}]   ;;  %s5025_s4 = inlined_call_operand.vmem [shape: f32[4,1,128], index: 4, kind: input, shape index: {}]   ;;  %s5026_s5 = inlined_call_operand.hbm [shape: bf16[128,128], index: 5, kind: input, shape index: {}]   ;;  %s5027_s6 = inlined_call_operand.hbm [shape: bf16[2,128,128], index: 6, kind: input, shape index: {}]   ;;  %s5028_s7 = inlined_call_operand.vmem [shape: f32[1,128], index: 7, kind: input, shape index: {}]   ;;  %s5029_s8 = inlined_call_operand.hbm [shape: f32[128,128], index: 8, kind: output, shape index: {}]  }
   0x1   :  { %14 = vsyncpa [#allocation6], 0 }
   0x2   :  { %15 = vsyncpa [#allocation9], 0 }
   0x3   :  { %16 = vsyncpa [#allocation12], 0 }
   0x4   :  { %17 = vsyncpa [#allocation4], 0  ;;  %s4298_s27 = smov [#allocation5]  }
   0x5   :  { %s35_s28 = sshll.u32 %s4298_s27, 4  ;;  %s36_s28 = int_to_ptr.vmem [resolvable:$true] %s35_s28 }
   0x6   :  { %s4156_s29 = scalar_lea.vmem %s36_s28, 2048  ;;  %p4161_p1 = scmp.lt.s32.totalorder %s36_s28, %s36_s28 }
   0x7   :  { %p4157_p0 = scmp.ne.s32.totalorder %s36_s28, %s4156_s29  ;;  %p4162_p2 = scmp.lt.s32.totalorder %s4156_s29, %s4156_s29 }
   0x9   :  { %p4163_p3 = por %p4162_p2, %p4161_p1 }
   0xb   :  { %p4164_p4 = pnand %p4163_p3, %p4157_p0 }
   0xd   :  { %4167 = shalt.err (!%p4164_p4)
}
   0xe   :  { %s4299_s30 = smov 128   ;;  %s4300_s9 = smov 8  }
   0xf   :  { %41 = dma.hbm_to_vmem [thread:$0]  %s5022_s1, 2048, %s36_s28, [#allocation6], %s4299_s30, %s4299_s30, %s4300_s9  }
  0x10   :  { %s4301_s12 = smov [#allocation8]   ;;  %s4302_s14 = smov [#allocation2]  }
  0x11   :  { %s59_s13 = sshll.u32 %s4301_s12, 4  ;;  %s23_s15 = sshll.u32 %s4302_s14, 4  ;;  %s60_s13 = int_to_ptr.vmem [resolvable:$true] %s59_s13  ;;  %s24_s15 = int_to_ptr.vmem [resolvable:$true] %s23_s15 }
  0x12   :  { %s4176_s16 = scalar_lea.vmem %s60_s13, 4096  ;;  %p4181_p6 = scmp.lt.s32.totalorder %s60_s13, %s60_s13 }
  0x13   :  { %p4177_p5 = scmp.ne.s32.totalorder %s60_s13, %s4176_s16  ;;  %p4182_p7 = scmp.lt.s32.totalorder %s4176_s16, %s4176_s16 }
  0x15   :  { %p4183_p8 = por %p4182_p7, %p4181_p6 }
  0x17   :  { %p4184_p9 = pnand %p4183_p8, %p4177_p5 }
  0x19   :  { %4187 = shalt.err (!%p4184_p9)
}
  0x1a   :  { %s4303_s17 = smov 64   ;;  %s4304_s18 = smov 4  }
  0x1b   :  { %65 = dma.hbm_to_vmem [thread:$0]  %s5024_s3, 4096, %s60_s13, [#allocation9], %s4303_s17, %s4303_s17, %s4304_s18  }
  0x1c   :  { %s4196_s1 = scalar_lea.vmem %s24_s15, 2048  ;;  %p4201_p11 = scmp.lt.s32.totalorder %s24_s15, %s24_s15 }
  0x1d   :  { %p4197_p10 = scmp.ne.s32.totalorder %s24_s15, %s4196_s1  ;;  %p4202_p12 = scmp.lt.s32.totalorder %s4196_s1, %s4196_s1 }
  0x1f   :  { %p4203_p13 = por %p4202_p12, %p4201_p11 }
  0x21   :  { %p4204_p0 = pnand %p4203_p13, %p4197_p10 }
  0x23   :  { %4207 = shalt.err (!%p4204_p0)
}
  0x24   :  { %29 = dma.hbm_to_vmem [thread:$0]  %s5021_s0, 2048, %s24_s15, [#allocation3], %s4303_s17, %s4303_s17, %s4304_s18  }
  0x25   :  { %s4305_s23 = smov [#allocation7]   ;;  %s4306_s25 = smov [#allocation10]  }
  0x26   :  { %s47_s24 = sshll.u32 %s4305_s23, 4  ;;  %s73_s3 = sshll.u32 %s4306_s25, 4  ;;  %s48_s24 = int_to_ptr.vmem [resolvable:$true] %s47_s24  ;;  %s74_s3 = int_to_ptr.vmem [resolvable:$true] %s73_s3 }
  0x27   :  { %s4216_s26 = scalar_lea.vmem %s48_s24, 4096  ;;  %p4221_p2 = scmp.lt.s32.totalorder %s48_s24, %s48_s24 }
  0x28   :  { %p4217_p1 = scmp.ne.s32.totalorder %s48_s24, %s4216_s26  ;;  %p4222_p3 = scmp.lt.s32.totalorder %s4216_s26, %s4216_s26 }
  0x2a   :  { %p4223_p4 = por %p4222_p3, %p4221_p2 }
  0x2c   :  { %p4224_p5 = pnand %p4223_p4, %p4217_p1 }
  0x2e   :  { %4227 = shalt.err (!%p4224_p5)
}
  0x2f   :  { %53 = dma.hbm_to_vmem [thread:$0]  %s5023_s2, 4096, %s48_s24, [#allocation6], %s4303_s17, %s4303_s17, %s4304_s18  }
  0x30   :  { %s4236_s0 = scalar_lea.vmem %s74_s3, 1024  ;;  %p4241_p7 = scmp.lt.s32.totalorder %s74_s3, %s74_s3 }
  0x31   :  { %p4237_p6 = scmp.ne.s32.totalorder %s74_s3, %s4236_s0  ;;  %p4242_p8 = scmp.lt.s32.totalorder %s4236_s0, %s4236_s0 }
  0x33   :  { %p4243_p9 = por %p4242_p8, %p4241_p7 }
  0x35   :  { %p4244_p10 = pnand %p4243_p9, %p4237_p6 }
  0x37   :  { %4247 = shalt.err (!%p4244_p10)
}
  0x38   :  { %79 = dma.hbm_to_vmem [thread:$0]  %s5026_s5, 1024, %s74_s3, [#allocation9], %s4303_s17, %s4303_s17, %s4304_s18  }
  0x39   :  { %s4307_s11 = smov [#allocation11]  }
  0x3a   :  { %s85_s12 = sshll.u32 %s4307_s11, 4  ;;  %s86_s12 = int_to_ptr.vmem [resolvable:$true] %s85_s12 }
  0x3b   :  { %s4256_s13 = scalar_lea.vmem %s86_s12, 2048  ;;  %p4261_p12 = scmp.lt.s32.totalorder %s86_s12, %s86_s12 }
  0x3c   :  { %p4257_p11 = scmp.ne.s32.totalorder %s86_s12, %s4256_s13  ;;  %p4262_p13 = scmp.lt.s32.totalorder %s4256_s13, %s4256_s13 }
  0x3e   :  { %p4263_p0 = por %p4262_p13, %p4261_p12 }
  0x40   :  { %p4264_p1 = pnand %p4263_p0, %p4257_p11 }
  0x42   :  { %4267 = shalt.err (!%p4264_p1)
}
  0x43   :  { %91 = dma.hbm_to_vmem [thread:$0]  %s5027_s6, 2048, %s86_s12, [#allocation12], %s4303_s17, %s4303_s17, %s4304_s18  }
  0x44   :  { %4288 = dma.done.wait [#allocation3], 2048  }
  0x45   :  { %4289 = vsyncadd [#allocation3], 4294965248 }
  0x46   :  { %4290 = dma.done.wait [#allocation6], 6144  }
  0x47   :  { %4291 = vsyncadd [#allocation6], 4294961152 }
  0x48   :  { %4292 = dma.done.wait [#allocation9], 5120  }
  0x49   :  { %4293 = vsyncadd [#allocation9], 4294962176 }
  0x4a   :  { %4294 = dma.done.wait [#allocation12], 2048  }
  0x4b   :  { %4295 = vsyncadd [#allocation12], 4294965248  ;;  %v159_v0 = vld [vmem:[#allocation5 + $0x70] sm:$0xff]  ;;  %v160_v1 = vld [vmem:[#allocation5 + $0x78] sm:$0xff] }
  0x4c   :  { %v157_v2 = vld [vmem:[#allocation5 + $0x60] sm:$0xff]  ;;  %v4390_v3 = vpack.c.bf16 %v160_v1, %v159_v0  ;;  %v158_v4 = vld [vmem:[#allocation5 + $0x68] sm:$0xff]  ;;  %v155_v6 = vld [vmem:[#allocation5 + $0x50] sm:$0xff] }
  0x4d   :  { %v4392_v5 = vpack.c.bf16 %v158_v4, %v157_v2  ;;  %v156_v7 = vld [vmem:[#allocation5 + $0x58] sm:$0xff]  ;;  %v153_v8 = vld [vmem:[#allocation5 + $0x40] sm:$0xff]  ;;  %v154_v10 = vld [vmem:[#allocation5 + $0x48] sm:$0xff] }
  0x4e   :  { %3499 = vmatprep.subr.bf16.mxu0 %v4390_v3  ;;  %v4397_v9 = vpack.c.bf16 %v156_v7, %v155_v6  ;;  %v4399_v11 = vld [vmem:[#allocation2] sm:$0xff]   ;;  %v4404_v12 = vpack.c.bf16 %v154_v10, %v153_v8  ;;  %v151_v13 = vld [vmem:[#allocation5 + $0x30] sm:$0xff]  ;;  %v152_v14 = vld [vmem:[#allocation5 + $0x38] sm:$0xff] }
  0x4f   :  { %3500 = vmatpush3.bf16.msra.mxu0 %v4390_v3  ;;  %3515 = vmatprep.mubr.bf16.mxu0 %v4399_v11  ;;  %v4408_v15 = vpack.c.bf16 %v152_v14, %v151_v13  ;;  %v149_v16 = vld [vmem:[#allocation5 + $0x20] sm:$0xff]  ;;  %v150_v17 = vld [vmem:[#allocation5 + $0x28] sm:$0xff]  ;;  %v147_v19 = vld [vmem:[#allocation5 + $0x10] sm:$0xff] }
  0x50   :  { %3501 = vmatprep.subr.bf16.mxu0 %v4392_v5  ;;  %v4412_v18 = vpack.c.bf16 %v150_v17, %v149_v16  ;;  %v148_v20 = vld [vmem:[#allocation5 + $0x18] sm:$0xff]  ;;  %v145_v21 = vld [vmem:[#allocation5] sm:$0xff]  ;;  %v146_v23 = vld [vmem:[#allocation5 + $0x8] sm:$0xff] }
  0x51   :  { %v4416_v22 = vpack.c.bf16 %v148_v20, %v147_v19  ;;  %v4038_v24 = vld [vmem:[#allocation8 + $0x38] sm:$0xff]   ;;  %v4039_v25 = vld [vmem:[#allocation8 + $0x30] sm:$0xff]   ;;  %v4420_v26 = vpack.c.bf16 %v146_v23, %v145_v21  ;;  %v4040_v27 = vld [vmem:[#allocation8 + $0x28] sm:$0xff]  }
  0x52   :  { %3547 = vmatprep.subr.bf16.mxu1 %v4038_v24  ;;  %v4041_v28 = vld [vmem:[#allocation8 + $0x20] sm:$0xff]   ;;  %v4023_v29 = vld [vmem:[#allocation2 + $0x8] sm:$0xff]   ;;  %v4024_v30 = vld [vmem:[#allocation2 + $0x10] sm:$0xff]  }
  0x53   :  { %3502 = vmatpush3.bf16.msra.mxu0 %v4392_v5  ;;  %3548 = vmatpush3.bf16.msra.mxu1 %v4038_v24  ;;  %v4042_v31 = vld [vmem:[#allocation8 + $0x18] sm:$0xff]   ;;  %v4043_v32 = vld [vmem:[#allocation8 + $0x10] sm:$0xff]   ;;  %v4026_v34 = vld [vmem:[#allocation2 + $0x20] sm:$0xff]  }
  0x54   :  { %3503 = vmatprep.subr.bf16.mxu0 %v4397_v9  ;;  %3549 = vmatprep.subr.bf16.mxu1 %v4039_v25  ;;  %v4025_v33 = vld [vmem:[#allocation2 + $0x18] sm:$0xff]   ;;  %v4027_v35 = vld [vmem:[#allocation2 + $0x28] sm:$0xff]   ;;  %v4028_v36 = vld [vmem:[#allocation2 + $0x30] sm:$0xff]  }
  0x55   :  { %v4029_v37 = vld [vmem:[#allocation2 + $0x38] sm:$0xff]   ;;  %v4030_v38 = vld [vmem:[#allocation2 + $0x40] sm:$0xff]   ;;  %v4031_v39 = vld [vmem:[#allocation2 + $0x48] sm:$0xff]  }
  0x56   :  { %v4032_v40 = vld [vmem:[#allocation2 + $0x50] sm:$0xff]   ;;  %v4033_v41 = vld [vmem:[#allocation2 + $0x58] sm:$0xff]   ;;  %v4034_v42 = vld [vmem:[#allocation2 + $0x60] sm:$0xff]  }
  0x57   :  { %3504 = vmatpush3.bf16.msra.mxu0 %v4397_v9  ;;  %3550 = vmatpush3.bf16.msra.mxu1 %v4039_v25  ;;  %v4425_v43 = vld [vmem:[#allocation2 + $0x68] sm:$0xff]   ;;  %v4427_v44 = vld [vmem:[#allocation2 + $0x70] sm:$0xff]   ;;  %v4431_v45 = vld [vmem:[#allocation2 + $0x78] sm:$0xff]  }
  0x58   :  { %3505 = vmatprep.subr.bf16.mxu0 %v4404_v12  ;;  %3551 = vmatprep.subr.bf16.mxu1 %v4040_v27  ;;  %v4044_v46 = vld [vmem:[#allocation8 + $0x8] sm:$0xff]   ;;  %v4045_v47 = vld [vmem:[#allocation8] sm:$0xff]   ;;  %v4046_v48 = vld [vmem:[#allocation7 + $0x38] sm:$0xff]  }
  0x59   :  { %v4047_v49 = vld [vmem:[#allocation8 + $0x78] sm:$0xff]   ;;  %v4050_v50 = vld [vmem:[#allocation8 + $0x70] sm:$0xff]   ;;  %v4053_v51 = vld [vmem:[#allocation8 + $0x68] sm:$0xff]  }
  0x5a   :  { %v4056_v52 = vld [vmem:[#allocation8 + $0x60] sm:$0xff]   ;;  %v4058_v53 = vld [vmem:[#allocation8 + $0x58] sm:$0xff]   ;;  %v4061_v54 = vld [vmem:[#allocation8 + $0x50] sm:$0xff]  }
  0x5b   :  { %3506 = vmatpush3.bf16.msra.mxu0 %v4404_v12  ;;  %3552 = vmatpush3.bf16.msra.mxu1 %v4040_v27  ;;  %v4063_v55 = vld [vmem:[#allocation8 + $0x48] sm:$0xff]   ;;  %v4065_v56 = vld [vmem:[#allocation8 + $0x40] sm:$0xff]   ;;  %v4048_v0 = vld [vmem:[#allocation7 + $0x30] sm:$0xff]  }
  0x5c   :  { %3507 = vmatprep.subr.bf16.mxu0 %v4408_v15  ;;  %3553 = vmatprep.subr.bf16.mxu1 %v4041_v28  ;;  %v4049_v4 = vld [vmem:[#allocation7 + $0x28] sm:$0xff]   ;;  %v4051_v13 = vld [vmem:[#allocation7 + $0x20] sm:$0xff]   ;;  %v4052_v17 = vld [vmem:[#allocation7 + $0x18] sm:$0xff]  }
  0x5d   :  { %v4054_v24 = vld [vmem:[#allocation7 + $0x10] sm:$0xff]  }
  0x5f   :  { %3508 = vmatpush3.bf16.msra.mxu0 %v4408_v15  ;;  %3554 = vmatpush3.bf16.msra.mxu1 %v4041_v28  ;;  %v4055_v28 = vld [vmem:[#allocation7 + $0x8] sm:$0xff]  }
  0x60   :  { %3509 = vmatprep.subr.bf16.mxu0 %v4412_v18  ;;  %3555 = vmatprep.subr.bf16.mxu1 %v4042_v31 }
  0x63   :  { %3510 = vmatpush3.bf16.msra.mxu0 %v4412_v18  ;;  %3556 = vmatpush3.bf16.msra.mxu1 %v4042_v31 }
  0x64   :  { %3511 = vmatprep.subr.bf16.mxu0 %v4416_v22  ;;  %3557 = vmatprep.subr.bf16.mxu1 %v4043_v32 }
  0x67   :  { %3512 = vmatpush3.bf16.msra.mxu0 %v4416_v22  ;;  %3558 = vmatpush3.bf16.msra.mxu1 %v4043_v32  ;;  %v4057_v32 = vld [vmem:[#allocation7] sm:$0xff]  }
  0x68   :  { %3513 = vmatprep.subr.bf16.mxu0 %v4420_v26  ;;  %3559 = vmatprep.subr.bf16.mxu1 %v4044_v46 }
  0x6b   :  { %3514 = vmatpush3.bf16.msra.mxu0 %v4420_v26  ;;  %3560 = vmatpush3.bf16.msra.mxu1 %v4044_v46  ;;  %v4062_v46 = vld [vmem:[#allocation7 + $0x68] sm:$0xff]  }
  0x6c   :  { %3561 = vmatprep.subr.bf16.mxu1 %v4045_v47  ;;  %3611 = vmatprep.subr.bf16.mxu0 %v4047_v49 }
  0x6e   :  { %3516 = vmatmul.mubr.bf16.vlgmr.msra.gmra.mxu0 %v4023_v29 }
  0x6f   :  { %3519 = vmatprep.mubr.bf16.mxu0 %v4024_v30  ;;  %3562 = vmatpush3.bf16.msra.mxu1 %v4045_v47 }
  0x70   :  { %3579 = vmatprep.subr.bf16.mxu1 %v4046_v48  ;;  %3612 = vmatpush3.bf16.msra.mxu0 %v4047_v49 }
  0x71   :  { %3613 = vmatprep.subr.bf16.mxu0 %v4050_v50 }
  0x74   :  { %3614 = vmatpush3.bf16.msra.mxu0 %v4050_v50 }
  0x75   :  { %3615 = vmatprep.subr.bf16.mxu0 %v4053_v51 }
  0x76   :  { %3520 = vmatmul.mubr.bf16.gmra.mxu0 %v4025_v33 }
  0x77   :  { %3523 = vmatprep.mubr.bf16.mxu0 %v4026_v34 }
  0x78   :  { %3616 = vmatpush3.bf16.msra.mxu0 %v4053_v51  ;;  %v4064_v51 = vld [vmem:[#allocation7 + $0x60] sm:$0xff]  }
  0x79   :  { %3617 = vmatprep.subr.bf16.mxu0 %v4056_v52 }
  0x7c   :  { %3618 = vmatpush3.bf16.msra.mxu0 %v4056_v52 }
  0x7d   :  { %3619 = vmatprep.subr.bf16.mxu0 %v4058_v53 }
  0x7e   :  { %3524 = vmatmul.mubr.bf16.gmra.mxu0 %v4027_v35  ;;  %v4059_v35 = vld [vmem:[#allocation7 + $0x78] sm:$0xff]  }
  0x7f   :  { %3527 = vmatprep.mubr.bf16.mxu0 %v4028_v36 }
  0x80   :  { %3620 = vmatpush3.bf16.msra.mxu0 %v4058_v53 }
  0x81   :  { %3621 = vmatprep.subr.bf16.mxu0 %v4061_v54 }
  0x84   :  { %3622 = vmatpush3.bf16.msra.mxu0 %v4061_v54  ;;  %v4066_v54 = vld [vmem:[#allocation7 + $0x58] sm:$0xff]  }
  0x85   :  { %3623 = vmatprep.subr.bf16.mxu0 %v4063_v55 }
  0x86   :  { %3528 = vmatmul.mubr.bf16.gmra.mxu0 %v4029_v37 }
  0x87   :  { %3531 = vmatprep.mubr.bf16.mxu0 %v4030_v38 }
  0x88   :  { %3624 = vmatpush3.bf16.msra.mxu0 %v4063_v55 }
  0x89   :  { %3625 = vmatprep.subr.bf16.mxu0 %v4065_v56 }
  0x8c   :  { %3626 = vmatpush3.bf16.msra.mxu0 %v4065_v56 }
  0x8e   :  { %3532 = vmatmul.mubr.bf16.gmra.mxu0 %v4031_v39 }
  0x8f   :  { %3535 = vmatprep.mubr.bf16.mxu0 %v4032_v40  ;;  %v4060_v40 = vld [vmem:[#allocation7 + $0x70] sm:$0xff]  }
  0x96   :  { %3536 = vmatmul.mubr.bf16.gmra.mxu0 %v4033_v41 }
  0x97   :  { %3539 = vmatprep.mubr.bf16.mxu0 %v4034_v42 }
  0x9e   :  { %3540 = vmatmul.mubr.bf16.gmra.mxu0 %v4425_v43 }
  0x9f   :  { %3543 = vmatprep.mubr.bf16.mxu0 %v4427_v44 }
  0xa6   :  { %3544 = vmatmul.mubr.bf16.gmra.mxu0 %v4431_v45 }
 0x12e   :  { %v3517_v57 = vpop.f32.mrf.mxu0 }
 0x130   :  { %v299_v58 = vpop.f32.mrf.mxu0 }
 0x132   :  { %v3518_v59 = vpop.f32.mrf.mxu0 }
 0x133   :  { %v427_v62 = vpack.c.bf16 %v3518_v59, %v3517_v57  ;;  %v4067_v59 = vld [vmem:[#allocation7 + $0x50] sm:$0xff]  }
 0x134   :  { %v302_v60 = vpop.f32.mrf.mxu0 }
 0x135   :  { %v426_v61 = vpack.c.bf16 %v302_v60, %v299_v58 }
 0x136   :  { %v3521_v63 = vpop.f32.mrf.mxu0 }
 0x137   :  { %3563 = vmatprep.mubr.bf16.mxu1 %v426_v61 }
 0x138   :  { %v315_v1 = vpop.f32.mrf.mxu0  ;;  %3564 = vmatmul.mubr.bf16.vlgmr.msra.gmra.mxu1 %v427_v62  ;;  %v4068_v62 = vld [vmem:[#allocation7 + $0x48] sm:$0xff]  }
 0x139   :  { %3580 = vmatpush3.bf16.msra.mxu1 %v4046_v48 }
 0x13a   :  { %v3522_v2 = vpop.f32.mrf.mxu0  ;;  %3581 = vmatprep.subr.bf16.mxu1 %v4048_v0 }
 0x13b   :  { %v429_v8 = vpack.c.bf16 %v3522_v2, %v3521_v63 }
 0x13c   :  { %v318_v6 = vpop.f32.mrf.mxu0 }
 0x13d   :  { %v428_v7 = vpack.c.bf16 %v318_v6, %v315_v1  ;;  %3582 = vmatpush3.bf16.msra.mxu1 %v4048_v0 }
 0x13e   :  { %v3525_v10 = vpop.f32.mrf.mxu0  ;;  %3583 = vmatprep.subr.bf16.mxu1 %v4049_v4 }
 0x13f   :  { %3567 = vmatprep.mubr.bf16.mxu1 %v428_v7 }
 0x140   :  { %v331_v14 = vpop.f32.mrf.mxu0  ;;  %3568 = vmatmul.mubr.bf16.gmra.mxu1 %v429_v8 }
 0x141   :  { %3584 = vmatpush3.bf16.msra.mxu1 %v4049_v4  ;;  %v4069_v4 = vld [vmem:[#allocation7 + $0x40] sm:$0xff]  }
 0x142   :  { %v3526_v16 = vpop.f32.mrf.mxu0  ;;  %3585 = vmatprep.subr.bf16.mxu1 %v4051_v13 }
 0x143   :  { %v431_v21 = vpack.c.bf16 %v3526_v16, %v3525_v10 }
 0x144   :  { %v334_v19 = vpop.f32.mrf.mxu0 }
 0x145   :  { %v430_v20 = vpack.c.bf16 %v334_v19, %v331_v14  ;;  %3586 = vmatpush3.bf16.msra.mxu1 %v4051_v13 }
 0x146   :  { %v3529_v23 = vpop.f32.mrf.mxu0  ;;  %3587 = vmatprep.subr.bf16.mxu1 %v4052_v17 }
 0x147   :  { %3571 = vmatprep.mubr.bf16.mxu1 %v430_v20 }
 0x148   :  { %v347_v25 = vpop.f32.mrf.mxu0  ;;  %3572 = vmatmul.mubr.bf16.gmra.mxu1 %v431_v21 }
 0x149   :  { %3588 = vmatpush3.bf16.msra.mxu1 %v4052_v17 }
 0x14a   :  { %v3530_v27 = vpop.f32.mrf.mxu0  ;;  %3589 = vmatprep.subr.bf16.mxu1 %v4054_v24 }
 0x14b   :  { %v433_v31 = vpack.c.bf16 %v3530_v27, %v3529_v23 }
 0x14c   :  { %v350_v29 = vpop.f32.mrf.mxu0 }
 0x14d   :  { %v432_v30 = vpack.c.bf16 %v350_v29, %v347_v25  ;;  %3590 = vmatpush3.bf16.msra.mxu1 %v4054_v24 }
 0x14e   :  { %3591 = vmatprep.subr.bf16.mxu1 %v4055_v28  ;;  %v3533_v33 = vpop.f32.mrf.mxu0 }
 0x14f   :  { %3575 = vmatprep.mubr.bf16.mxu1 %v432_v30 }
 0x150   :  { %3576 = vmatmul.mubr.bf16.gmra.mxu1 %v433_v31  ;;  %v363_v34 = vpop.f32.mrf.mxu0 }
 0x151   :  { %3592 = vmatpush3.bf16.msra.mxu1 %v4055_v28  ;;  %3595 = vmatprep.mubr.bf16.mxu1 %v4420_v26 }
 0x152   :  { %3593 = vmatprep.subr.bf16.mxu1 %v4057_v32  ;;  %v3534_v36 = vpop.f32.mrf.mxu0 }
 0x153   :  { %v435_v37 = vpack.c.bf16 %v3534_v36, %v3533_v33 }
 0x154   :  { %v366_v38 = vpop.f32.mrf.mxu0 }
 0x155   :  { %3594 = vmatpush3.bf16.msra.mxu1 %v4057_v32  ;;  %v434_v39 = vpack.c.bf16 %v366_v38, %v363_v34 }
 0x156   :  { %3643 = vmatprep.subr.bf16.mxu1 %v4059_v35  ;;  %v3537_v41 = vpop.f32.mrf.mxu0 }
 0x157   :  { %3627 = vmatprep.mubr.bf16.mxu0 %v434_v39 }
 0x158   :  { %3596 = vmatmul.mubr.bf16.vlgmr.msra.gmra.mxu1 %v4416_v22  ;;  %v379_v42 = vpop.f32.mrf.mxu0  ;;  %3628 = vmatmul.mubr.bf16.vlgmr.msra.gmra.mxu0 %v435_v37 }
 0x159   :  { %3644 = vmatpush3.bf16.msra.mxu1 %v4059_v35  ;;  %3599 = vmatprep.mubr.bf16.mxu1 %v4412_v18 }
 0x15a   :  { %3645 = vmatprep.subr.bf16.mxu1 %v4060_v40  ;;  %v3538_v47 = vpop.f32.mrf.mxu0 }
 0x15b   :  { %v437_v48 = vpack.c.bf16 %v3538_v47, %v3537_v41 }
 0x15c   :  { %v382_v49 = vpop.f32.mrf.mxu0 }
 0x15d   :  { %3646 = vmatpush3.bf16.msra.mxu1 %v4060_v40  ;;  %v436_v50 = vpack.c.bf16 %v382_v49, %v379_v42 }
 0x15e   :  { %3647 = vmatprep.subr.bf16.mxu1 %v4062_v46  ;;  %v3541_v52 = vpop.f32.mrf.mxu0 }
 0x15f   :  { %3631 = vmatprep.mubr.bf16.mxu0 %v436_v50 }
 0x160   :  { %3600 = vmatmul.mubr.bf16.gmra.mxu1 %v4408_v15  ;;  %v395_v53 = vpop.f32.mrf.mxu0  ;;  %3632 = vmatmul.mubr.bf16.gmra.mxu0 %v437_v48 }
 0x161   :  { %3648 = vmatpush3.bf16.msra.mxu1 %v4062_v46  ;;  %3603 = vmatprep.mubr.bf16.mxu1 %v4404_v12 }
 0x162   :  { %3649 = vmatprep.subr.bf16.mxu1 %v4064_v51  ;;  %v3542_v55 = vpop.f32.mrf.mxu0 }
 0x163   :  { %v439_v56 = vpack.c.bf16 %v3542_v55, %v3541_v52  ;;  %v4494_v52 = vld [vmem:[%s5025_s4] ss:$0 sm:$0xff] }
 0x164   :  { %v398_v57 = vpop.f32.mrf.mxu0 }
 0x165   :  { %3650 = vmatpush3.bf16.msra.mxu1 %v4064_v51  ;;  %v438_v58 = vpack.c.bf16 %v398_v57, %v395_v53 }
 0x166   :  { %3651 = vmatprep.subr.bf16.mxu1 %v4066_v54  ;;  %v3545_v60 = vpop.f32.mrf.mxu0 }
 0x167   :  { %3635 = vmatprep.mubr.bf16.mxu0 %v438_v58 }
 0x168   :  { %3604 = vmatmul.mubr.bf16.gmra.mxu1 %v4397_v9  ;;  %v411_v61 = vpop.f32.mrf.mxu0  ;;  %3636 = vmatmul.mubr.bf16.gmra.mxu0 %v439_v56  ;;  %v4499_v56 = vld [vmem:[%s5025_s4 + $0x1] ss:$0 sm:$0xff] }
 0x169   :  { %3652 = vmatpush3.bf16.msra.mxu1 %v4066_v54  ;;  %3607 = vmatprep.mubr.bf16.mxu1 %v4392_v5 }
 0x16a   :  { %3653 = vmatprep.subr.bf16.mxu1 %v4067_v59  ;;  %v3546_v63 = vpop.f32.mrf.mxu0 }
 0x16b   :  { %v441_v0 = vpack.c.bf16 %v3546_v63, %v3545_v60 }
 0x16c   :  { %v414_v1 = vpop.f32.mrf.mxu0 }
 0x16d   :  { %3654 = vmatpush3.bf16.msra.mxu1 %v4067_v59  ;;  %v440_v2 = vpack.c.bf16 %v414_v1, %v411_v61 }
 0x16e   :  { %3655 = vmatprep.subr.bf16.mxu1 %v4068_v62 }
 0x16f   :  { %3639 = vmatprep.mubr.bf16.mxu0 %v440_v2 }
 0x170   :  { %3608 = vmatmul.mubr.bf16.gmra.mxu1 %v4390_v3  ;;  %3640 = vmatmul.mubr.bf16.gmra.mxu0 %v441_v0 }
 0x171   :  { %3656 = vmatpush3.bf16.msra.mxu1 %v4068_v62  ;;  %3659 = vmatprep.mubr.bf16.mxu1 %v4420_v26 }
 0x172   :  { %3657 = vmatprep.subr.bf16.mxu1 %v4069_v4  ;;  %3691 = vmatprep.mubr.bf16.mxu0 %v4399_v11 }
 0x175   :  { %3658 = vmatpush3.bf16.msra.mxu1 %v4069_v4 }
 0x178   :  { %3660 = vmatmul.mubr.bf16.vlgmr.msra.gmra.mxu1 %v4416_v22 }
 0x179   :  { %3663 = vmatprep.mubr.bf16.mxu1 %v4412_v18 }
 0x180   :  { %3664 = vmatmul.mubr.bf16.gmra.mxu1 %v4408_v15 }
 0x181   :  { %3667 = vmatprep.mubr.bf16.mxu1 %v4404_v12 }
 0x188   :  { %3668 = vmatmul.mubr.bf16.gmra.mxu1 %v4397_v9 }
 0x189   :  { %3671 = vmatprep.mubr.bf16.mxu1 %v4392_v5 }
 0x190   :  { %3672 = vmatmul.mubr.bf16.gmra.mxu1 %v4390_v3 }
 0x1f8   :  { %v3565_v6 = vpop.f32.mrf.mxu1 }
 0x1fa   :  { %v556_v26 = vpop.f32.mrf.mxu1 }
 0x1fc   :  { %v3566_v7 = vpop.f32.mrf.mxu1 }
 0x1fe   :  { %v559_v8 = vpop.f32.mrf.mxu1 }
 0x200   :  { %v4451_v11 = vpop.f32.mrf.mxu1 }
 0x202   :  { %v572_v10 = vpop.f32.mrf.mxu1 }
 0x204   :  { %v4453_v22 = vpop.f32.mrf.mxu1 }
 0x206   :  { %v4455_v18 = vpop.f32.mrf.mxu1 }
 0x208   :  { %v4457_v15 = vpop.f32.mrf.mxu1 }
 0x20a   :  { %v4459_v12 = vpop.f32.mrf.mxu1 }
 0x20c   :  { %v4461_v9 = vpop.f32.mrf.mxu1 }
 0x20e   :  { %v4463_v5 = vpop.f32.mrf.mxu1 }
 0x210   :  { %v4465_v3 = vpop.f32.mrf.mxu1 }
 0x212   :  { %v4467_v13 = vpop.f32.mrf.mxu1 }
 0x214   :  { %v4469_v14 = vpop.f32.mrf.mxu1 }
 0x216   :  { %v4471_v16 = vpop.f32.mrf.mxu1 }
 0x218   :  { %v3597_v17 = vpop.f32.mrf.mxu1  ;;  %v3629_v20 = vpop.f32.mrf.mxu0 }
 0x219   :  { %v710_v48 = vadd.f32 %v3597_v17, %v3565_v6 }
 0x21a   :  { %v701_v19 = vpop.f32.mrf.mxu1  ;;  %v919_v24 = vpop.f32.mrf.mxu0 }
 0x21b   :  { %v702_v49 = vadd.f32 %v701_v19, %v556_v26  ;;  %v773_v60 = vadd.f32 %v4494_v52, %v710_v48 }
 0x21c   :  { %v3598_v21 = vpop.f32.mrf.mxu1  ;;  %v3630_v28 = vpop.f32.mrf.mxu0 }
 0x21d   :  { %v771_v61 = vadd.f32 %v4494_v52, %v702_v49  ;;  %v713_v62 = vadd.f32 %v3598_v21, %v3566_v7 }
 0x21e   :  { %v704_v23 = vpop.f32.mrf.mxu1  ;;  %v922_v31 = vpop.f32.mrf.mxu0 }
 0x21f   :  { %v705_v53 = vadd.f32 %v704_v23, %v559_v8  ;;  %v787_v23 = vmax.f32 %v771_v61, 0.0 }
 0x220   :  { %v3601_v25 = vpop.f32.mrf.mxu1  ;;  %v3633_v34 = vpop.f32.mrf.mxu0 }
 0x221   :  { %v772_v1 = vadd.f32 %v4494_v52, %v705_v53 }
 0x222   :  { %v717_v27 = vpop.f32.mrf.mxu1  ;;  %v935_v37 = vpop.f32.mrf.mxu0 }
 0x223   :  { %v718_v6 = vadd.f32 %v717_v27, %v572_v10  ;;  %v788_v21 = vmax.f32 %v772_v1, 0.0 }
 0x224   :  { %v3602_v29 = vpop.f32.mrf.mxu1  ;;  %v3634_v40 = vpop.f32.mrf.mxu0 }
 0x225   :  { %v775_v10 = vadd.f32 %v4494_v52, %v718_v6 }
 0x226   :  { %v720_v30 = vpop.f32.mrf.mxu1  ;;  %v938_v46 = vpop.f32.mrf.mxu0 }
 0x227   :  { %v721_v27 = vadd.f32 %v720_v30, %v4455_v18 }
 0x228   :  { %v4473_v32 = vpop.f32.mrf.mxu1  ;;  %v4489_v51 = vpop.f32.mrf.mxu0 }
 0x22a   :  { %v4475_v33 = vpop.f32.mrf.mxu1  ;;  %v951_v63 = vpop.f32.mrf.mxu0 }
 0x22c   :  { %v4477_v35 = vpop.f32.mrf.mxu1 }
 0x22e   :  { %v4479_v36 = vpop.f32.mrf.mxu1 }
 0x230   :  { %v4481_v38 = vpop.f32.mrf.mxu1 }
 0x232   :  { %v4483_v39 = vpop.f32.mrf.mxu1 }
 0x234   :  { %v4485_v41 = vpop.f32.mrf.mxu1 }
 0x236   :  { %v4487_v42 = vpop.f32.mrf.mxu1 }
 0x238   :  { %v3661_v47 = vpop.f32.mrf.mxu1 }
 0x239   :  { %v1073_v54 = vadd.f32 %v3661_v47, %v3629_v20  ;;  %v789_v20 = vmax.f32 %v773_v60, 0.0 }
 0x23a   :  { %v1064_v50 = vpop.f32.mrf.mxu1 }
 0x23b   :  { %v1065_v55 = vadd.f32 %v1064_v50, %v919_v24  ;;  %v1137_v2 = vadd.f32 %v4499_v56, %v1073_v54  ;;  %v774_v24 = vadd.f32 %v4494_v52, %v713_v62  ;;  %v726_v50 = vadd.f32 %v3601_v25, %v4451_v11 }
 0x23c   :  { %v3662_v57 = vpop.f32.mrf.mxu1 }
 0x23d   :  { %v1135_v58 = vadd.f32 %v4499_v56, %v1065_v55  ;;  %v1076_v59 = vadd.f32 %v3662_v57, %v3630_v28  ;;  %v3638_v28 = vpop.f32.mrf.mxu0  ;;  %v1153_v47 = vmax.f32 %v1137_v2, 0.0  ;;  %v790_v62 = vmax.f32 %v774_v24, 0.0 }
 0x23e   :  { %v1067_v0 = vpop.f32.mrf.mxu1  ;;  %v777_v30 = vadd.f32 %v4494_v52, %v726_v50 }
 0x23f   :  { %v1068_v4 = vadd.f32 %v1067_v0, %v922_v31  ;;  %v1151_v8 = vmax.f32 %v1135_v58, 0.0  ;;  %v1138_v17 = vadd.f32 %v4499_v56, %v1076_v59  ;;  %v729_v59 = vadd.f32 %v3602_v29, %v4453_v22  ;;  %v954_v60 = vpop.f32.mrf.mxu0 }
 0x240   :  { %v3665_v26 = vpop.f32.mrf.mxu1  ;;  %v4518_v11 = vadd.f32 %v1153_v47, %v789_v20  ;;  %v734_v22 = vadd.f32 %v4475_v33, %v4459_v12  ;;  %v737_v20 = vadd.f32 %v4479_v36, %v4463_v5  ;;  %v793_v36 = vmax.f32 %v777_v30, 0.0 }
 0x241   :  { %v1136_v19 = vadd.f32 %v4499_v56, %v1068_v4  ;;  %v1089_v31 = vadd.f32 %v3665_v26, %v3633_v34  ;;  %v4512_v54 = vadd.f32 %v1151_v8, %v787_v23  ;;  %v1154_v55 = vmax.f32 %v1138_v17, 0.0  ;;  %v3641_v8 = vpop.f32.mrf.mxu0 }
 0x242   :  { %v1080_v7 = vpop.f32.mrf.mxu1  ;;  %v776_v34 = vadd.f32 %v4494_v52, %v721_v27  ;;  %v791_v4 = vmax.f32 %v775_v10, 0.0  ;;  %v778_v6 = vadd.f32 %v4494_v52, %v729_v59  ;;  %v742_v26 = vadd.f32 %v4473_v32, %v4457_v15 }
 0x243   :  { %v1152_v48 = vmax.f32 %v1136_v19, 0.0  ;;  %v1081_v49 = vadd.f32 %v1080_v7, %v935_v37  ;;  %v1141_v0 = vadd.f32 %v4499_v56, %v1089_v31  ;;  %v4527_v29 = vadd.f32 %v1154_v55, %v790_v62  ;;  %v967_v10 = vpop.f32.mrf.mxu0 }
 0x244   :  { %v3666_v53 = vpop.f32.mrf.mxu1  ;;  %v792_v24 = vmax.f32 %v776_v34, 0.0  ;;  %v779_v32 = vadd.f32 %v4494_v52, %v734_v22 }
 0x245   :  { %v4514_v57 = vadd.f32 %v1152_v48, %v788_v21  ;;  %v1139_v58 = vadd.f32 %v4499_v56, %v1081_v49  ;;  %v1092_v61 = vadd.f32 %v3666_v53, %v3634_v40  ;;  %v1157_v7 = vmax.f32 %v1141_v0, 0.0  ;;  %v3642_v34 = vpop.f32.mrf.mxu0 }
 0x246   :  { %v1083_v37 = vpop.f32.mrf.mxu1  ;;  %v745_v48 = vadd.f32 %v4477_v35, %v4461_v9  ;;  %v794_v53 = vmax.f32 %v778_v6, 0.0  ;;  %v795_v62 = vmax.f32 %v779_v32, 0.0 }
 0x247   :  { %v1183_v18 = vadd.f32 %v4514_v57, %v4512_v54  ;;  %v1155_v25 = vmax.f32 %v1139_v58, 0.0  ;;  %v1084_v1 = vadd.f32 %v1083_v37, %v938_v46  ;;  %v1142_v17 = vadd.f32 %v4499_v56, %v1092_v61 }
 0x248   :  { %v3669_v2 = vpop.f32.mrf.mxu1  ;;  %v4549_v58 = vadd.f32 %v1157_v7, %v793_v36  ;;  %v781_v37 = vadd.f32 %v4494_v52, %v742_v26 }
 0x249   :  { %v1184_v40 = vadd.f32 %v1183_v18, %v4518_v11  ;;  %v1140_v19 = vadd.f32 %v4499_v56, %v1084_v1  ;;  %v4537_v23 = vadd.f32 %v1155_v25, %v791_v4  ;;  %v1105_v47 = vadd.f32 %v3669_v2, %v4489_v51 }
 0x24a   :  { %v1096_v46 = vpop.f32.mrf.mxu1  ;;  %v1158_v50 = vmax.f32 %v1142_v17, 0.0  ;;  %v780_v51 = vadd.f32 %v4494_v52, %v737_v20  ;;  %v782_v18 = vadd.f32 %v4494_v52, %v745_v48  ;;  %v750_v25 = vadd.f32 %v4483_v39, %v4467_v13 }
 0x24b   :  { %v1185_v12 = vadd.f32 %v1184_v40, %v4527_v29  ;;  %v1097_v33 = vadd.f32 %v1096_v46, %v951_v63  ;;  %v1156_v21 = vmax.f32 %v1140_v19, 0.0  ;;  %v1145_v9 = vadd.f32 %v4499_v56, %v1105_v47 }
 0x24c   :  { %v3670_v15 = vpop.f32.mrf.mxu1  ;;  %v4558_v30 = vadd.f32 %v1158_v50, %v794_v53  ;;  %v796_v2 = vmax.f32 %v780_v51, 0.0  ;;  %v753_v4 = vadd.f32 %v4487_v42, %v4471_v16  ;;  %v797_v39 = vmax.f32 %v781_v37, 0.0 }
 0x24d   :  { %v1186_v49 = vadd.f32 %v1185_v12, %v4537_v23  ;;  %v1143_v5 = vadd.f32 %v4499_v56, %v1097_v33  ;;  %v4546_v27 = vadd.f32 %v1156_v21, %v792_v24  ;;  %v1108_v63 = vadd.f32 %v3670_v15, %v3638_v28  ;;  %v970_v24 = vpop.f32.mrf.mxu0 }
 0x24e   :  { %v1099_v31 = vpop.f32.mrf.mxu1  ;;  %v1161_v6 = vmax.f32 %v1145_v9, 0.0  ;;  %v758_v46 = vadd.f32 %v4481_v38, %v4465_v3  ;;  %v783_v33 = vadd.f32 %v4494_v52, %v750_v25  ;;  %v798_v47 = vmax.f32 %v782_v18, 0.0 }
 0x24f   :  { %v1100_v55 = vadd.f32 %v1099_v31, %v954_v60  ;;  %v1187_v59 = vadd.f32 %v1186_v49, %v4546_v27  ;;  %v1159_v35 = vmax.f32 %v1143_v5, 0.0  ;;  %v1146_v0 = vadd.f32 %v4499_v56, %v1108_v63 }
 0x250   :  { %v3673_v61 = vpop.f32.mrf.mxu1  ;;  %v784_v15 = vadd.f32 %v4494_v52, %v753_v4  ;;  %v1177_v48 = vadd.f32 %v1161_v6, %v797_v39  ;;  %v785_v5 = vadd.f32 %v4494_v52, %v758_v46  ;;  %v799_v50 = vmax.f32 %v783_v33, 0.0 }
 0x251   :  { %v1144_v28 = vadd.f32 %v4499_v56, %v1100_v55  ;;  %v1188_v60 = vadd.f32 %v1187_v59, %v4549_v58  ;;  %v1175_v26 = vadd.f32 %v1159_v35, %v795_v62  ;;  %v1121_v19 = vadd.f32 %v3673_v61, %v3641_v8 }
 0x252   :  { %v1112_v1 = vpop.f32.mrf.mxu1  ;;  %v1162_v42 = vmax.f32 %v1146_v0, 0.0  ;;  %v761_v8 = vadd.f32 %v4485_v41, %v4469_v14  ;;  %v800_v53 = vmax.f32 %v784_v15, 0.0  ;;  %v801_v35 = vmax.f32 %v785_v5, 0.0 }
 0x253   :  { %v1160_v22 = vmax.f32 %v1144_v28, 0.0  ;;  %v1113_v40 = vadd.f32 %v1112_v1, %v967_v10  ;;  %v1189_v17 = vadd.f32 %v1188_v60, %v4558_v30  ;;  %v1149_v38 = vadd.f32 %v4499_v56, %v1121_v19 }
 0x254   :  { %v3674_v13 = vpop.f32.mrf.mxu1  ;;  %v1178_v10 = vadd.f32 %v1162_v42, %v798_v47  ;;  %v786_v41 = vadd.f32 %v4494_v52, %v761_v8 }
 0x255   :  { %v4567_v20 = vadd.f32 %v1160_v22, %v796_v2  ;;  %v1147_v12 = vadd.f32 %v4499_v56, %v1113_v40  ;;  %v1190_v16 = vadd.f32 %v1189_v17, %v1175_v26  ;;  %v1124_v7 = vadd.f32 %v3674_v13, %v3642_v34 }
 0x256   :  { %v1115_v21 = vpop.f32.mrf.mxu1  ;;  %v1165_v51 = vmax.f32 %v1149_v38, 0.0  ;;  %v802_v62 = vmax.f32 %v786_v41, 0.0 }
 0x257   :  { %v1116_v32 = vadd.f32 %v1115_v21, %v970_v24  ;;  %v1191_v3 = vadd.f32 %v1190_v16, %v4567_v20  ;;  %v1163_v49 = vmax.f32 %v1147_v12, 0.0  ;;  %v1150_v31 = vadd.f32 %v4499_v56, %v1124_v7 }
 0x258   :  { %v1181_v18 = vadd.f32 %v1165_v51, %v801_v35  ;;  %v4070_v35 = vld [vmem:[#allocation8 + $0xb8] sm:$0xff]  }
 0x259   :  { %v1148_v36 = vadd.f32 %v4499_v56, %v1116_v32  ;;  %v1192_v63 = vadd.f32 %v1191_v3, %v1177_v48  ;;  %v1179_v55 = vadd.f32 %v1163_v49, %v799_v50  ;;  %v1166_v37 = vmax.f32 %v1150_v31, 0.0  ;;  %3723 = vmatprep.subr.bf16.mxu1 %v4070_v35 }
 0x25a   :  { %3724 = vmatpush3.bf16.msra.mxu1 %v4070_v35  ;;  %v4097_v35 = vld [vmem:[#allocation8 + $0xc0] sm:$0xff]  }
 0x25b   :  { %v1164_v14 = vmax.f32 %v1148_v36, 0.0  ;;  %v1193_v59 = vadd.f32 %v1192_v63, %v1178_v10  ;;  %v1182_v25 = vadd.f32 %v1166_v37, %v802_v62 }
 0x25d   :  { %v1180_v9 = vadd.f32 %v1164_v14, %v800_v53  ;;  %v1194_v61 = vadd.f32 %v1193_v59, %v1179_v55 }
 0x25f   :  { %v1195_v28 = vadd.f32 %v1194_v61, %v1180_v9  ;;  %v4071_v61 = vld [vmem:[#allocation8 + $0xb0] sm:$0xff]  }
 0x260   :  { %3725 = vmatprep.subr.bf16.mxu1 %v4071_v61 }
 0x261   :  { %v1196_v60 = vadd.f32 %v1195_v28, %v1181_v18  ;;  %3726 = vmatpush3.bf16.msra.mxu1 %v4071_v61 }
 0x263   :  { %v1197_v34 = vadd.f32 %v1196_v60, %v1182_v25  ;;  %v4073_v60 = vld [vmem:[#allocation8 + $0xa0] sm:$0xff]  }
 0x265   :  { %v1198_v0 = vrot.slane %v1197_v34, 4 }
 0x267   :  { %v1199_v1 = vadd.f32 %v1198_v0, %v1197_v34 }
 0x269   :  { %v1200_v56 = vrot.slane %v1199_v1, 2 }
 0x26b   :  { %v1201_v2 = vadd.f32 %v1200_v56, %v1199_v1  ;;  %v4074_v1 = vld [vmem:[#allocation8 + $0x98] sm:$0xff]  }
 0x26d   :  { %v1202_v4 = vrot.slane %v1201_v2, 1 }
 0x26f   :  { %v1203_v22 = vadd.f32 %v1202_v4, %v1201_v2  ;;  %v4075_v4 = vld [vmem:[#allocation8 + $0x90] sm:$0xff]  }
 0x271   :  { %v1205_v52 = vmul.f32 0.0078125, %v1203_v22 }
 0x273   :  { %v4581_v40 = vsub.f32 %v4512_v54, %v1205_v52  ;;  %v4584_v6 = vsub.f32 %v4514_v57, %v1205_v52  ;;  %v4587_v17 = vsub.f32 %v4518_v11, %v1205_v52  ;;  %v4590_v19 = vsub.f32 %v4527_v29, %v1205_v52 }
 0x274   :  { %v4593_v13 = vsub.f32 %v4537_v23, %v1205_v52  ;;  %v4596_v39 = vsub.f32 %v4549_v58, %v1205_v52  ;;  %v4599_v46 = vsub.f32 %v4558_v30, %v1205_v52  ;;  %v4601_v54 = vsub.f32 %v1175_v26, %v1205_v52 }
 0x275   :  { %v4603_v12 = vsub.f32 %v1177_v48, %v1205_v52  ;;  %v4605_v57 = vsub.f32 %v1178_v10, %v1205_v52  ;;  %v4607_v11 = vsub.f32 %v1179_v55, %v1205_v52  ;;  %v4609_v33 = vsub.f32 %v1181_v18, %v1205_v52  ;;  %v4072_v18 = vld [vmem:[#allocation8 + $0xa8] sm:$0xff]  }
 0x276   :  { %v4611_v29 = vsub.f32 %v1182_v25, %v1205_v52  ;;  %v1222_v23 = vmul.f32 %v4581_v40, %v4581_v40  ;;  %v1223_v58 = vmul.f32 %v4584_v6, %v4584_v6  ;;  %v1224_v30 = vmul.f32 %v4587_v17, %v4587_v17  ;;  %3727 = vmatprep.subr.bf16.mxu1 %v4072_v18 }
 0x277   :  { %v4620_v24 = vsub.f32 %v4546_v27, %v1205_v52  ;;  %v1225_v16 = vmul.f32 %v4590_v19, %v4590_v19  ;;  %v1226_v7 = vmul.f32 %v4593_v13, %v4593_v13  ;;  %v1228_v15 = vmul.f32 %v4596_v39, %v4596_v39  ;;  %3728 = vmatpush3.bf16.msra.mxu1 %v4072_v18 }
 0x278   :  { %v1238_v26 = vadd.f32 %v1223_v58, %v1222_v23  ;;  %v1215_v48 = vsub.f32 %v4567_v20, %v1205_v52  ;;  %v1229_v27 = vmul.f32 %v4599_v46, %v4599_v46  ;;  %v1230_v38 = vmul.f32 %v4601_v54, %v4601_v54  ;;  %3729 = vmatprep.subr.bf16.mxu1 %v4073_v60 }
 0x279   :  { %v1227_v47 = vmul.f32 %v4620_v24, %v4620_v24  ;;  %v1232_v50 = vmul.f32 %v4603_v12, %v4603_v12  ;;  %v1219_v63 = vsub.f32 %v1180_v9, %v1205_v52  ;;  %v1233_v31 = vmul.f32 %v4605_v57, %v4605_v57 }
 0x27a   :  { %v1239_v42 = vadd.f32 %v1238_v26, %v1224_v30  ;;  %v1231_v5 = vmul.f32 %v1215_v48, %v1215_v48  ;;  %v1234_v20 = vmul.f32 %v4607_v11, %v4607_v11  ;;  %v1236_v55 = vmul.f32 %v4609_v33, %v4609_v33 }
 0x27b   :  { %v1235_v41 = vmul.f32 %v1219_v63, %v1219_v63  ;;  %v1237_v37 = vmul.f32 %v4611_v29, %v4611_v29  ;;  %3730 = vmatpush3.bf16.msra.mxu1 %v4073_v60  ;;  %v4080_v60 = vld [vmem:[#allocation7 + $0xb0] sm:$0xff]  }
 0x27c   :  { %v1240_v21 = vadd.f32 %v1239_v42, %v1225_v16  ;;  %3731 = vmatprep.subr.bf16.mxu1 %v4074_v1 }
 0x27e   :  { %v1241_v8 = vadd.f32 %v1240_v21, %v1226_v7 }
 0x27f   :  { %3732 = vmatpush3.bf16.msra.mxu1 %v4074_v1  ;;  %v4081_v1 = vld [vmem:[#allocation7 + $0xa8] sm:$0xff]  }
 0x280   :  { %v1242_v32 = vadd.f32 %v1241_v8, %v1227_v47  ;;  %3733 = vmatprep.subr.bf16.mxu1 %v4075_v4 }
 0x282   :  { %v1243_v3 = vadd.f32 %v1242_v32, %v1228_v15 }
 0x283   :  { %3734 = vmatpush3.bf16.msra.mxu1 %v4075_v4 }
 0x284   :  { %v1244_v49 = vadd.f32 %v1243_v3, %v1229_v27 }
 0x286   :  { %v1245_v36 = vadd.f32 %v1244_v49, %v1230_v38  ;;  %v4703_v38 = vld [vmem:[#allocation2 + $0x28] sm:$0xff]   ;;  %v4706_v49 = vld [vmem:[#allocation2 + $0x30] sm:$0xff]  }
 0x288   :  { %v1246_v10 = vadd.f32 %v1245_v36, %v1231_v5  ;;  %v4709_v5 = vld [vmem:[#allocation2 + $0x38] sm:$0xff]   ;;  %v4712_v36 = vld [vmem:[#allocation2 + $0x40] sm:$0xff]  }
 0x289   :  { %5035 = vst [vmem:[#allocation19_spill] sm:$0xff] %v4712_v36 }
 0x28a   :  { %v1247_v53 = vadd.f32 %v1246_v10, %v1232_v50  ;;  %v4715_v50 = vld [vmem:[#allocation2 + $0x48] sm:$0xff]   ;;  %v4718_v10 = vld [vmem:[#allocation2 + $0x50] sm:$0xff]  }
 0x28b   :  { %5036 = vst [vmem:[#allocation20_spill] sm:$0xff] %v4715_v50  ;;  %5037 = vst [vmem:[#allocation21_spill] sm:$0xff] %v4718_v10 }
 0x28c   :  { %v1248_v14 = vadd.f32 %v1247_v53, %v1233_v31  ;;  %v4724_v31 = vld [vmem:[#allocation2 + $0x60] sm:$0xff]   ;;  %v4076_v53 = vld [vmem:[#allocation8 + $0x88] sm:$0xff]  }
 0x28d   :  { %5039 = vst [vmem:[#allocation23_spill] sm:$0xff] %v4724_v31  ;;  %3735 = vmatprep.subr.bf16.mxu1 %v4076_v53 }
 0x28e   :  { %v1249_v51 = vadd.f32 %v1248_v14, %v1234_v20  ;;  %3736 = vmatpush3.bf16.msra.mxu1 %v4076_v53  ;;  %v4077_v20 = vld [vmem:[#allocation8 + $0x80] sm:$0xff]   ;;  %v4078_v14 = vld [vmem:[#allocation7 + $0xb8] sm:$0xff]  }
 0x28f   :  { %3737 = vmatprep.subr.bf16.mxu1 %v4077_v20  ;;  %v4091_v53 = vld [vmem:[#allocation7 + $0xf8] sm:$0xff]  }
 0x290   :  { %v1250_v59 = vadd.f32 %v1249_v51, %v1235_v41  ;;  %v4079_v41 = vld [vmem:[#allocation8 + $0xf8] sm:$0xff]   ;;  %v4082_v51 = vld [vmem:[#allocation8 + $0xf0] sm:$0xff]  }
 0x292   :  { %v1251_v9 = vadd.f32 %v1250_v59, %v1236_v55  ;;  %3738 = vmatpush3.bf16.msra.mxu1 %v4077_v20  ;;  %v4085_v55 = vld [vmem:[#allocation8 + $0xe8] sm:$0xff]  }
 0x293   :  { %3755 = vmatprep.subr.bf16.mxu1 %v4078_v14  ;;  %v4095_v59 = vld [vmem:[#allocation8 + $0xc8] sm:$0xff]  }
 0x294   :  { %v1252_v62 = vadd.f32 %v1251_v9, %v1237_v37 }
 0x296   :  { %v1253_v28 = vrot.slane %v1252_v62, 4 }
 0x298   :  { %v1254_v25 = vadd.f32 %v1253_v28, %v1252_v62 }
 0x29a   :  { %v1255_v34 = vrot.slane %v1254_v25, 2 }
 0x29c   :  { %v1256_v0 = vadd.f32 %v1255_v34, %v1254_v25 }
 0x29e   :  { %v1257_v56 = vrot.slane %v1256_v0, 1 }
 0x2a0   :  { %v1258_v2 = vadd.f32 %v1257_v56, %v1256_v0 }
 0x2a2   :  { %v1259_v22 = vmul.f32 0.0078125, %v1258_v2 }
 0x2a4   :  { %v1260_v52 = vadd.f32 1e-05, %v1259_v22 }
 0x2a6   :  { %4126 = vrsqrt.f32 %v1260_v52  ;;  %v4083_v52 = vld [vmem:[#allocation7 + $0xa0] sm:$0xff]  }
 0x2b3   :  { %v4127_v23 = vpop.eup %4126 }
 0x2b4   :  { %v1275_v58 = vmul.f32 %v4127_v23, %v1219_v63  ;;  %v1276_v30 = vmul.f32 %v4127_v23, %v4609_v33  ;;  %v1277_v26 = vmul.f32 %v4127_v23, %v4611_v29  ;;  %v1274_v16 = vmul.f32 %v4127_v23, %v4607_v11  ;;  %v4721_v63 = vld [vmem:[#allocation2 + $0x58] sm:$0xff]  }
 0x2b5   :  { %v1272_v42 = vmul.f32 %v4127_v23, %v4603_v12  ;;  %v1273_v7 = vmul.f32 %v4127_v23, %v4605_v57  ;;  %v1270_v21 = vmul.f32 %v4127_v23, %v4601_v54  ;;  %v1271_v47 = vmul.f32 %v4127_v23, %v1215_v48  ;;  %5038 = vst [vmem:[#allocation22_spill] sm:$0xff] %v4721_v63 }
 0x2b6   :  { %v4651_v8 = vpack.c.bf16 %v1277_v26, %v1276_v30  ;;  %v4653_v15 = vpack.c.bf16 %v1275_v58, %v1274_v16  ;;  %v1268_v32 = vmul.f32 %v4127_v23, %v4596_v39  ;;  %v1269_v27 = vmul.f32 %v4127_v23, %v4599_v46  ;;  %v4084_v30 = vld [vmem:[#allocation7 + $0x98] sm:$0xff]  }
 0x2b7   :  { %v4657_v33 = vpack.c.bf16 %v1273_v7, %v1272_v42  ;;  %v4659_v29 = vpack.c.bf16 %v1271_v47, %v1270_v21  ;;  %v1266_v39 = vmul.f32 %v4127_v23, %v4593_v13  ;;  %v1267_v46 = vmul.f32 %v4127_v23, %v4620_v24  ;;  %v4086_v21 = vld [vmem:[#allocation7 + $0x90] sm:$0xff]  }
 0x2b8   :  { %3675 = vmatprep.subr.bf16.mxu0 %v4651_v8  ;;  %v4662_v12 = vpack.c.bf16 %v1269_v27, %v1268_v32  ;;  %v1264_v57 = vmul.f32 %v4127_v23, %v4587_v17  ;;  %v1265_v11 = vmul.f32 %v4127_v23, %v4590_v19  ;;  %v1262_v13 = vmul.f32 %v4127_v23, %v4581_v40  ;;  %v4691_v17 = vld [vmem:[#allocation2 + $0x8] sm:$0xff]   ;;  %v4694_v19 = vld [vmem:[#allocation2 + $0x10] sm:$0xff]   ;;  %v4697_v40 = vld [vmem:[#allocation2 + $0x18] sm:$0xff]  }
 0x2b9   :  { %3676 = vmatpush3.bf16.msra.mxu0 %v4651_v8  ;;  %v4674_v54 = vpack.c.bf16 %v1267_v46, %v1266_v39  ;;  %v1263_v24 = vmul.f32 %v4127_v23, %v4584_v6  ;;  %v4700_v6 = vld [vmem:[#allocation2 + $0x20] sm:$0xff]   ;;  %v4087_v27 = vld [vmem:[#allocation7 + $0x88] sm:$0xff]  }
 0x2ba   :  { %3677 = vmatprep.subr.bf16.mxu0 %v4653_v15  ;;  %v4680_v48 = vpack.c.bf16 %v1265_v11, %v1264_v57  ;;  %v4089_v11 = vld [vmem:[#allocation7 + $0x80] sm:$0xff]  }
 0x2bb   :  { %v4686_v3 = vpack.c.bf16 %v1263_v24, %v1262_v13 }
 0x2bd   :  { %3678 = vmatpush3.bf16.msra.mxu0 %v4653_v15 }
 0x2be   :  { %3679 = vmatprep.subr.bf16.mxu0 %v4657_v33 }
 0x2c1   :  { %3680 = vmatpush3.bf16.msra.mxu0 %v4657_v33 }
 0x2c2   :  { %3681 = vmatprep.subr.bf16.mxu0 %v4659_v29 }
 0x2c5   :  { %3682 = vmatpush3.bf16.msra.mxu0 %v4659_v29 }
 0x2c6   :  { %3683 = vmatprep.subr.bf16.mxu0 %v4662_v12 }
 0x2c9   :  { %3684 = vmatpush3.bf16.msra.mxu0 %v4662_v12 }
 0x2ca   :  { %3685 = vmatprep.subr.bf16.mxu0 %v4674_v54 }
 0x2cd   :  { %3686 = vmatpush3.bf16.msra.mxu0 %v4674_v54 }
 0x2ce   :  { %3687 = vmatprep.subr.bf16.mxu0 %v4680_v48 }
 0x2d1   :  { %3688 = vmatpush3.bf16.msra.mxu0 %v4680_v48 }
 0x2d2   :  { %3689 = vmatprep.subr.bf16.mxu0 %v4686_v3 }
 0x2d5   :  { %3690 = vmatpush3.bf16.msra.mxu0 %v4686_v3 }
 0x2d6   :  { %3787 = vmatprep.subr.bf16.mxu0 %v4079_v41 }
 0x2d8   :  { %3692 = vmatmul.mubr.bf16.vlgmr.msra.gmra.mxu0 %v4691_v17 }
 0x2d9   :  { %3695 = vmatprep.mubr.bf16.mxu0 %v4694_v19  ;;  %3788 = vmatpush3.bf16.msra.mxu0 %v4079_v41 }
 0x2da   :  { %3789 = vmatprep.subr.bf16.mxu0 %v4082_v51 }
 0x2dd   :  { %3790 = vmatpush3.bf16.msra.mxu0 %v4082_v51 }
 0x2de   :  { %3791 = vmatprep.subr.bf16.mxu0 %v4085_v55 }
 0x2e0   :  { %3696 = vmatmul.mubr.bf16.gmra.mxu0 %v4697_v40 }
 0x2e1   :  { %3699 = vmatprep.mubr.bf16.mxu0 %v4700_v6  ;;  %3792 = vmatpush3.bf16.msra.mxu0 %v4085_v55  ;;  %v4092_v55 = vld [vmem:[#allocation7 + $0xf0] sm:$0xff]  }
 0x2e8   :  { %3700 = vmatmul.mubr.bf16.gmra.mxu0 %v4703_v38 }
 0x2e9   :  { %3703 = vmatprep.mubr.bf16.mxu0 %v4706_v49 }
 0x2f0   :  { %3704 = vmatmul.mubr.bf16.gmra.mxu0 %v4709_v5 }
 0x2f1   :  { %3707 = vmatprep.mubr.bf16.mxu0 %v4712_v36 }
 0x2f8   :  { %3708 = vmatmul.mubr.bf16.gmra.mxu0 %v4715_v50 }
 0x2f9   :  { %3711 = vmatprep.mubr.bf16.mxu0 %v4718_v10 }
 0x300   :  { %3712 = vmatmul.mubr.bf16.gmra.mxu0 %v4721_v63 }
 0x301   :  { %3715 = vmatprep.mubr.bf16.mxu0 %v4724_v31 }
 0x308   :  { %3716 = vmatmul.mubr.bf16.gmra.mxu0 %v4425_v43  ;;  %v4088_v43 = vld [vmem:[#allocation8 + $0xe0] sm:$0xff]  }
 0x309   :  { %3719 = vmatprep.mubr.bf16.mxu0 %v4427_v44  ;;  %3793 = vmatprep.subr.bf16.mxu0 %v4088_v43  ;;  %v4090_v44 = vld [vmem:[#allocation8 + $0xd8] sm:$0xff]  }
 0x30a   :  { %3794 = vmatpush3.bf16.msra.mxu0 %v4088_v43 }
 0x30b   :  { %3795 = vmatprep.subr.bf16.mxu0 %v4090_v44 }
 0x30e   :  { %3796 = vmatpush3.bf16.msra.mxu0 %v4090_v44 }
 0x310   :  { %3720 = vmatmul.mubr.bf16.gmra.mxu0 %v4431_v45  ;;  %v4093_v45 = vld [vmem:[#allocation8 + $0xd0] sm:$0xff]  }
 0x311   :  { %3797 = vmatprep.subr.bf16.mxu0 %v4093_v45 }
 0x312   :  { %3798 = vmatpush3.bf16.msra.mxu0 %v4093_v45  ;;  %v4094_v45 = vld [vmem:[#allocation7 + $0xe8] sm:$0xff]  }
 0x313   :  { %3799 = vmatprep.subr.bf16.mxu0 %v4095_v59 }
 0x316   :  { %3800 = vmatpush3.bf16.msra.mxu0 %v4095_v59 }
 0x317   :  { %3801 = vmatprep.subr.bf16.mxu0 %v4097_v35 }
 0x31a   :  { %3802 = vmatpush3.bf16.msra.mxu0 %v4097_v35 }
 0x398   :  { %v3693_v61 = vpop.f32.mrf.mxu0 }
 0x39a   :  { %v1320_v37 = vpop.f32.mrf.mxu0 }
 0x39c   :  { %v3694_v9 = vpop.f32.mrf.mxu0 }
 0x39d   :  { %v1448_v28 = vpack.c.bf16 %v3694_v9, %v3693_v61  ;;  %v4096_v9 = vld [vmem:[#allocation7 + $0xe0] sm:$0xff]  }
 0x39e   :  { %v1323_v62 = vpop.f32.mrf.mxu0 }
 0x39f   :  { %v1447_v18 = vpack.c.bf16 %v1323_v62, %v1320_v37 }
 0x3a0   :  { %v3697_v25 = vpop.f32.mrf.mxu0 }
 0x3a1   :  { %3739 = vmatprep.mubr.bf16.mxu1 %v1447_v18 }
 0x3a2   :  { %v1336_v34 = vpop.f32.mrf.mxu0  ;;  %3740 = vmatmul.mubr.bf16.vlgmr.msra.gmra.mxu1 %v1448_v28  ;;  %v4098_v28 = vld [vmem:[#allocation7 + $0xd8] sm:$0xff]  }
 0x3a3   :  { %3756 = vmatpush3.bf16.msra.mxu1 %v4078_v14 }
 0x3a4   :  { %v3698_v0 = vpop.f32.mrf.mxu0  ;;  %3757 = vmatprep.subr.bf16.mxu1 %v4080_v60 }
 0x3a5   :  { %v1450_v4 = vpack.c.bf16 %v3698_v0, %v3697_v25 }
 0x3a6   :  { %v1339_v56 = vpop.f32.mrf.mxu0 }
 0x3a7   :  { %v1449_v2 = vpack.c.bf16 %v1339_v56, %v1336_v34  ;;  %3758 = vmatpush3.bf16.msra.mxu1 %v4080_v60 }
 0x3a8   :  { %v3701_v22 = vpop.f32.mrf.mxu0  ;;  %3759 = vmatprep.subr.bf16.mxu1 %v4081_v1 }
 0x3a9   :  { %3743 = vmatprep.mubr.bf16.mxu1 %v1449_v2 }
 0x3aa   :  { %v1352_v23 = vpop.f32.mrf.mxu0  ;;  %3744 = vmatmul.mubr.bf16.gmra.mxu1 %v1450_v4  ;;  %v4100_v4 = vld [vmem:[#allocation7 + $0xc8] sm:$0xff]  }
 0x3ab   :  { %3760 = vmatpush3.bf16.msra.mxu1 %v4081_v1  ;;  %v4099_v1 = vld [vmem:[#allocation7 + $0xd0] sm:$0xff]  }
 0x3ac   :  { %v3702_v58 = vpop.f32.mrf.mxu0  ;;  %3761 = vmatprep.subr.bf16.mxu1 %v4083_v52 }
 0x3ad   :  { %v1452_v42 = vpack.c.bf16 %v3702_v58, %v3701_v22 }
 0x3ae   :  { %v1355_v26 = vpop.f32.mrf.mxu0 }
 0x3af   :  { %v1451_v16 = vpack.c.bf16 %v1355_v26, %v1352_v23  ;;  %3762 = vmatpush3.bf16.msra.mxu1 %v4083_v52  ;;  %v4144_v26 = vld [vmem:[#allocation2] sm:$0xff]  }
 0x3b0   :  { %v3705_v7 = vpop.f32.mrf.mxu0  ;;  %3763 = vmatprep.subr.bf16.mxu1 %v4084_v30 }
 0x3b1   :  { %3747 = vmatprep.mubr.bf16.mxu1 %v1451_v16 }
 0x3b2   :  { %v1368_v47 = vpop.f32.mrf.mxu0  ;;  %3748 = vmatmul.mubr.bf16.gmra.mxu1 %v1452_v42 }
 0x3b3   :  { %3764 = vmatpush3.bf16.msra.mxu1 %v4084_v30  ;;  %v4101_v30 = vld [vmem:[#allocation7 + $0xc0] sm:$0xff]  }
 0x3b4   :  { %v3706_v32 = vpop.f32.mrf.mxu0  ;;  %3765 = vmatprep.subr.bf16.mxu1 %v4086_v21 }
 0x3b5   :  { %v1454_v57 = vpack.c.bf16 %v3706_v32, %v3705_v7 }
 0x3b6   :  { %v1371_v39 = vpop.f32.mrf.mxu0 }
 0x3b7   :  { %v1453_v46 = vpack.c.bf16 %v1371_v39, %v1368_v47  ;;  %3766 = vmatpush3.bf16.msra.mxu1 %v4086_v21  ;;  %v4103_v39 = vld [vmem:[#allocation10 + $0x30] sm:$0xff]  }
 0x3b8   :  { %3767 = vmatprep.subr.bf16.mxu1 %v4087_v27  ;;  %v3709_v13 = vpop.f32.mrf.mxu0 }
 0x3b9   :  { %3751 = vmatprep.mubr.bf16.mxu1 %v1453_v46 }
 0x3ba   :  { %3752 = vmatmul.mubr.bf16.gmra.mxu1 %v1454_v57  ;;  %v1384_v24 = vpop.f32.mrf.mxu0 }
 0x3bb   :  { %3768 = vmatpush3.bf16.msra.mxu1 %v4087_v27  ;;  %3771 = vmatprep.mubr.bf16.mxu1 %v4686_v3  ;;  %v4102_v27 = vld [vmem:[#allocation10 + $0x38] sm:$0xff]  }
 0x3bc   :  { %3769 = vmatprep.subr.bf16.mxu1 %v4089_v11  ;;  %v3710_v20 = vpop.f32.mrf.mxu0 }
 0x3bd   :  { %v1456_v14 = vpack.c.bf16 %v3710_v20, %v3709_v13  ;;  %v4105_v20 = vld [vmem:[#allocation10 + $0x20] sm:$0xff]  }
 0x3be   :  { %v1387_v41 = vpop.f32.mrf.mxu0 }
 0x3bf   :  { %3770 = vmatpush3.bf16.msra.mxu1 %v4089_v11  ;;  %v1455_v51 = vpack.c.bf16 %v1387_v41, %v1384_v24  ;;  %v4104_v11 = vld [vmem:[#allocation10 + $0x28] sm:$0xff]  }
 0x3c0   :  { %3819 = vmatprep.subr.bf16.mxu1 %v4091_v53  ;;  %v3713_v43 = vpop.f32.mrf.mxu0 }
 0x3c1   :  { %3803 = vmatprep.mubr.bf16.mxu0 %v1455_v51 }
 0x3c2   :  { %3772 = vmatmul.mubr.bf16.vlgmr.msra.gmra.mxu1 %v4680_v48  ;;  %v1400_v44 = vpop.f32.mrf.mxu0  ;;  %3804 = vmatmul.mubr.bf16.vlgmr.msra.gmra.mxu0 %v1456_v14 }
 0x3c3   :  { %3775 = vmatprep.mubr.bf16.mxu1 %v4674_v54  ;;  %3820 = vmatpush3.bf16.msra.mxu1 %v4091_v53 }
 0x3c4   :  { %3821 = vmatprep.subr.bf16.mxu1 %v4092_v55  ;;  %v3714_v59 = vpop.f32.mrf.mxu0 }
 0x3c5   :  { %v1458_v35 = vpack.c.bf16 %v3714_v59, %v3713_v43  ;;  %v4107_v59 = vld [vmem:[#allocation10 + $0x10] sm:$0xff]  }
 0x3c6   :  { %v1403_v61 = vpop.f32.mrf.mxu0 }
 0x3c7   :  { %3822 = vmatpush3.bf16.msra.mxu1 %v4092_v55  ;;  %v1457_v37 = vpack.c.bf16 %v1403_v61, %v1400_v44  ;;  %v4106_v55 = vld [vmem:[#allocation10 + $0x18] sm:$0xff]  }
 0x3c8   :  { %3823 = vmatprep.subr.bf16.mxu1 %v4094_v45  ;;  %v3717_v62 = vpop.f32.mrf.mxu0 }
 0x3c9   :  { %3807 = vmatprep.mubr.bf16.mxu0 %v1457_v37 }
 0x3ca   :  { %3776 = vmatmul.mubr.bf16.gmra.mxu1 %v4662_v12  ;;  %v1416_v18 = vpop.f32.mrf.mxu0  ;;  %3808 = vmatmul.mubr.bf16.gmra.mxu0 %v1458_v35 }
 0x3cb   :  { %3779 = vmatprep.mubr.bf16.mxu1 %v4659_v29  ;;  %3824 = vmatpush3.bf16.msra.mxu1 %v4094_v45 }
 0x3cc   :  { %3825 = vmatprep.subr.bf16.mxu1 %v4096_v9  ;;  %v3718_v25 = vpop.f32.mrf.mxu0 }
 0x3cd   :  { %v1460_v60 = vpack.c.bf16 %v3718_v25, %v3717_v62  ;;  %v4109_v25 = vld [vmem:[#allocation10] sm:$0xff]  }
 0x3ce   :  { %v1419_v34 = vpop.f32.mrf.mxu0 }
 0x3cf   :  { %3826 = vmatpush3.bf16.msra.mxu1 %v4096_v9  ;;  %v1459_v0 = vpack.c.bf16 %v1419_v34, %v1416_v18  ;;  %v4108_v9 = vld [vmem:[#allocation10 + $0x8] sm:$0xff]  }
 0x3d0   :  { %3827 = vmatprep.subr.bf16.mxu1 %v4098_v28  ;;  %v3721_v56 = vpop.f32.mrf.mxu0 }
 0x3d1   :  { %3811 = vmatprep.mubr.bf16.mxu0 %v1459_v0 }
 0x3d2   :  { %3780 = vmatmul.mubr.bf16.gmra.mxu1 %v4657_v33  ;;  %v1432_v2 = vpop.f32.mrf.mxu0  ;;  %3812 = vmatmul.mubr.bf16.gmra.mxu0 %v1460_v60 }
 0x3d3   :  { %3783 = vmatprep.mubr.bf16.mxu1 %v4653_v15  ;;  %3828 = vmatpush3.bf16.msra.mxu1 %v4098_v28 }
 0x3d4   :  { %3829 = vmatprep.subr.bf16.mxu1 %v4099_v1  ;;  %v3722_v22 = vpop.f32.mrf.mxu0 }
 0x3d5   :  { %v1462_v52 = vpack.c.bf16 %v3722_v22, %v3721_v56 }
 0x3d6   :  { %v1435_v23 = vpop.f32.mrf.mxu0 }
 0x3d7   :  { %3830 = vmatpush3.bf16.msra.mxu1 %v4099_v1  ;;  %v1461_v58 = vpack.c.bf16 %v1435_v23, %v1432_v2 }
 0x3d8   :  { %3831 = vmatprep.subr.bf16.mxu1 %v4100_v4 }
 0x3d9   :  { %3815 = vmatprep.mubr.bf16.mxu0 %v1461_v58 }
 0x3da   :  { %3784 = vmatmul.mubr.bf16.gmra.mxu1 %v4651_v8  ;;  %3816 = vmatmul.mubr.bf16.gmra.mxu0 %v1462_v52 }
 0x3db   :  { %3832 = vmatpush3.bf16.msra.mxu1 %v4100_v4  ;;  %3835 = vmatprep.mubr.bf16.mxu1 %v4686_v3 }
 0x3dc   :  { %3833 = vmatprep.subr.bf16.mxu1 %v4101_v30  ;;  %3867 = vmatprep.mubr.bf16.mxu0 %v4144_v26 }
 0x3df   :  { %3834 = vmatpush3.bf16.msra.mxu1 %v4101_v30 }
 0x3e0   :  { %3899 = vmatprep.subr.bf16.mxu1 %v4102_v27 }
 0x3e2   :  { %3836 = vmatmul.mubr.bf16.vlgmr.msra.gmra.mxu1 %v4680_v48 }
 0x3e3   :  { %3839 = vmatprep.mubr.bf16.mxu1 %v4674_v54  ;;  %3900 = vmatpush3.bf16.msra.mxu1 %v4102_v27 }
 0x3e4   :  { %3901 = vmatprep.subr.bf16.mxu1 %v4103_v39 }
 0x3e7   :  { %3902 = vmatpush3.bf16.msra.mxu1 %v4103_v39  ;;  %v4805_v39 = vld [vmem:[%s5025_s4 + $0x2] ss:$0 sm:$0xff] }
 0x3e8   :  { %3903 = vmatprep.subr.bf16.mxu1 %v4104_v11 }
 0x3ea   :  { %3840 = vmatmul.mubr.bf16.gmra.mxu1 %v4662_v12 }
 0x3eb   :  { %3843 = vmatprep.mubr.bf16.mxu1 %v4659_v29  ;;  %3904 = vmatpush3.bf16.msra.mxu1 %v4104_v11 }
 0x3ec   :  { %3905 = vmatprep.subr.bf16.mxu1 %v4105_v20 }
 0x3ef   :  { %3906 = vmatpush3.bf16.msra.mxu1 %v4105_v20 }
 0x3f0   :  { %3907 = vmatprep.subr.bf16.mxu1 %v4106_v55 }
 0x3f2   :  { %3844 = vmatmul.mubr.bf16.gmra.mxu1 %v4657_v33 }
 0x3f3   :  { %3847 = vmatprep.mubr.bf16.mxu1 %v4653_v15  ;;  %3908 = vmatpush3.bf16.msra.mxu1 %v4106_v55 }
 0x3f4   :  { %3909 = vmatprep.subr.bf16.mxu1 %v4107_v59 }
 0x3f7   :  { %3910 = vmatpush3.bf16.msra.mxu1 %v4107_v59  ;;  %v4811_v59 = vld [vmem:[%s5025_s4 + $0x3] ss:$0 sm:$0xff] }
 0x3f8   :  { %3911 = vmatprep.subr.bf16.mxu1 %v4108_v9 }
 0x3fa   :  { %3848 = vmatmul.mubr.bf16.gmra.mxu1 %v4651_v8 }
 0x3fb   :  { %3912 = vmatpush3.bf16.msra.mxu1 %v4108_v9 }
 0x3fc   :  { %3913 = vmatprep.subr.bf16.mxu1 %v4109_v25 }
 0x3ff   :  { %3914 = vmatpush3.bf16.msra.mxu1 %v4109_v25 }
 0x462   :  { %v4746_v16 = vpop.f32.mrf.mxu1 }
 0x464   :  { %v4748_v3 = vpop.f32.mrf.mxu1 }
 0x466   :  { %v4750_v42 = vpop.f32.mrf.mxu1 }
 0x468   :  { %v4752_v7 = vpop.f32.mrf.mxu1 }
 0x46a   :  { %v4754_v48 = vpop.f32.mrf.mxu1 }
 0x46c   :  { %v4756_v54 = vpop.f32.mrf.mxu1 }
 0x46e   :  { %v4758_v12 = vpop.f32.mrf.mxu1 }
 0x470   :  { %v4760_v29 = vpop.f32.mrf.mxu1 }
 0x472   :  { %v4762_v33 = vpop.f32.mrf.mxu1 }
 0x474   :  { %v4764_v15 = vpop.f32.mrf.mxu1 }
 0x476   :  { %v4766_v8 = vpop.f32.mrf.mxu1 }
 0x478   :  { %v4768_v21 = vpop.f32.mrf.mxu1 }
 0x47a   :  { %v4770_v47 = vpop.f32.mrf.mxu1 }
 0x47c   :  { %v4772_v32 = vpop.f32.mrf.mxu1 }
 0x47e   :  { %v4774_v46 = vpop.f32.mrf.mxu1 }
 0x480   :  { %v4776_v57 = vpop.f32.mrf.mxu1 }
 0x482   :  { %v3773_v13 = vpop.f32.mrf.mxu1  ;;  %v3805_v53 = vpop.f32.mrf.mxu0 }
 0x483   :  { %v1733_v58 = vadd.f32 %v3773_v13, %v4746_v16 }
 0x484   :  { %v1724_v24 = vpop.f32.mrf.mxu1  ;;  %v1943_v51 = vpop.f32.mrf.mxu0 }
 0x485   :  { %v1725_v30 = vadd.f32 %v1724_v24, %v4748_v3  ;;  %v1797_v24 = vadd.f32 %v4805_v39, %v1733_v58 }
 0x486   :  { %v3774_v14 = vpop.f32.mrf.mxu1  ;;  %v3806_v45 = vpop.f32.mrf.mxu0 }
 0x487   :  { %v1795_v9 = vadd.f32 %v4805_v39, %v1725_v30  ;;  %v1736_v25 = vadd.f32 %v3774_v14, %v4750_v42  ;;  %v1813_v58 = vmax.f32 %v1797_v24, 0.0 }
 0x488   :  { %v1727_v41 = vpop.f32.mrf.mxu1  ;;  %v1946_v37 = vpop.f32.mrf.mxu0 }
 0x489   :  { %v1728_v11 = vadd.f32 %v1727_v41, %v4752_v7  ;;  %v1798_v30 = vadd.f32 %v4805_v39, %v1736_v25 }
 0x48a   :  { %v4778_v43 = vpop.f32.mrf.mxu1  ;;  %v3809_v28 = vpop.f32.mrf.mxu0 }
 0x48b   :  { %v1796_v7 = vadd.f32 %v4805_v39, %v1728_v11 }
 0x48c   :  { %v1740_v44 = vpop.f32.mrf.mxu1  ;;  %v1959_v0 = vpop.f32.mrf.mxu0 }
 0x48d   :  { %v1812_v10 = vmax.f32 %v1796_v7, 0.0 }
 0x48e   :  { %v4780_v35 = vpop.f32.mrf.mxu1  ;;  %v3810_v2 = vpop.f32.mrf.mxu0 }
 0x48f   :  { %v1752_v25 = vadd.f32 %v4780_v35, %v4758_v12 }
 0x490   :  { %v1743_v61 = vpop.f32.mrf.mxu1  ;;  %v1962_v52 = vpop.f32.mrf.mxu0 }
 0x492   :  { %v4782_v62 = vpop.f32.mrf.mxu1  ;;  %v4800_v27 = vpop.f32.mrf.mxu0 }
 0x494   :  { %v4784_v18 = vpop.f32.mrf.mxu1  ;;  %v1975_v31 = vpop.f32.mrf.mxu0 }
 0x495   :  { %v1757_v12 = vadd.f32 %v4784_v18, %v4764_v15 }
 0x496   :  { %v4786_v60 = vpop.f32.mrf.mxu1  ;;  %v3814_v42 = vpop.f32.mrf.mxu0 }
 0x498   :  { %v4788_v34 = vpop.f32.mrf.mxu1 }
 0x49a   :  { %v4790_v1 = vpop.f32.mrf.mxu1 }
 0x49c   :  { %v4792_v56 = vpop.f32.mrf.mxu1 }
 0x49e   :  { %v4794_v4 = vpop.f32.mrf.mxu1 }
 0x4a0   :  { %v4796_v22 = vpop.f32.mrf.mxu1 }
 0x4a2   :  { %v3837_v23 = vpop.f32.mrf.mxu1 }
 0x4a3   :  { %v2097_v20 = vadd.f32 %v3837_v23, %v3805_v53 }
 0x4a4   :  { %v2088_v26 = vpop.f32.mrf.mxu1 }
 0x4a5   :  { %v2089_v55 = vadd.f32 %v2088_v26, %v1943_v51  ;;  %v2161_v53 = vadd.f32 %v4811_v59, %v2097_v20  ;;  %v1741_v51 = vadd.f32 %v1740_v44, %v4756_v54  ;;  %v1744_v44 = vadd.f32 %v1743_v61, %v4760_v29 }
 0x4a6   :  { %v3838_v16 = vpop.f32.mrf.mxu1 }
 0x4a7   :  { %v2159_v3 = vadd.f32 %v4811_v59, %v2089_v55  ;;  %v2100_v13 = vadd.f32 %v3838_v16, %v3806_v45  ;;  %v1811_v16 = vmax.f32 %v1795_v9, 0.0  ;;  %v2177_v50 = vmax.f32 %v2161_v53, 0.0 }
 0x4a8   :  { %v2091_v63 = vpop.f32.mrf.mxu1  ;;  %v1799_v54 = vadd.f32 %v4805_v39, %v1741_v51 }
 0x4a9   :  { %v2092_v41 = vadd.f32 %v2091_v63, %v1946_v37  ;;  %v2175_v26 = vmax.f32 %v2159_v3, 0.0  ;;  %v2162_v55 = vadd.f32 %v4811_v59, %v2100_v13  ;;  %v1749_v63 = vadd.f32 %v4778_v43, %v4754_v48 }
 0x4aa   :  { %v3841_v23 = vpop.f32.mrf.mxu1  ;;  %v1814_v48 = vmax.f32 %v1798_v30, 0.0  ;;  %v4834_v43 = vadd.f32 %v2177_v50, %v1813_v58 }
 0x4ab   :  { %v2160_v45 = vadd.f32 %v4811_v59, %v2092_v41  ;;  %v2113_v37 = vadd.f32 %v3841_v23, %v3809_v28  ;;  %v4827_v3 = vadd.f32 %v2175_v26, %v1811_v16  ;;  %v2178_v13 = vmax.f32 %v2162_v55, 0.0 }
 0x4ac   :  { %v2104_v14 = vpop.f32.mrf.mxu1  ;;  %v1801_v28 = vadd.f32 %v4805_v39, %v1749_v63  ;;  %v1815_v23 = vmax.f32 %v1799_v54, 0.0  ;;  %v1765_v26 = vadd.f32 %v4782_v62, %v4762_v33  ;;  %v1760_v16 = vadd.f32 %v4788_v34, %v4768_v21 }
 0x4ad   :  { %v2176_v11 = vmax.f32 %v2160_v45, 0.0  ;;  %v2105_v36 = vadd.f32 %v2104_v14, %v1959_v0  ;;  %v1978_v0 = vpop.f32.mrf.mxu0  ;;  %v2165_v41 = vadd.f32 %v4811_v59, %v2113_v37  ;;  %v4843_v35 = vadd.f32 %v2178_v13, %v1814_v48 }
 0x4ae   :  { %v3842_v20 = vpop.f32.mrf.mxu1  ;;  %v1803_v62 = vadd.f32 %v4805_v39, %v1757_v12  ;;  %v1817_v34 = vmax.f32 %v1801_v28, 0.0  ;;  %v1805_v28 = vadd.f32 %v4805_v39, %v1765_v26  ;;  %v1776_v26 = vadd.f32 %v4796_v22, %v4776_v57 }
 0x4af   :  { %v4829_v24 = vadd.f32 %v2176_v11, %v1812_v10  ;;  %v2163_v9 = vadd.f32 %v4811_v59, %v2105_v36  ;;  %v2116_v7 = vadd.f32 %v3842_v20, %v3810_v2  ;;  %v1800_v10 = vadd.f32 %v4805_v39, %v1744_v44  ;;  %v3817_v55 = vpop.f32.mrf.mxu0 }
 0x4b0   :  { %v2107_v53 = vpop.f32.mrf.mxu1  ;;  %v1802_v2 = vadd.f32 %v4805_v39, %v1752_v25  ;;  %v2181_v11 = vmax.f32 %v2165_v41, 0.0  ;;  %v1768_v44 = vadd.f32 %v4786_v60, %v4766_v8 }
 0x4b1   :  { %v2207_v29 = vadd.f32 %v4829_v24, %v4827_v3  ;;  %v2179_v61 = vmax.f32 %v2163_v9, 0.0  ;;  %v2108_v36 = vadd.f32 %v2107_v53, %v1962_v52  ;;  %v2166_v45 = vadd.f32 %v4811_v59, %v2116_v7  ;;  %v1991_v13 = vpop.f32.mrf.mxu0 }
 0x4b2   :  { %v3845_v51 = vpop.f32.mrf.mxu1  ;;  %v1816_v14 = vmax.f32 %v1800_v10, 0.0  ;;  %v1818_v7 = vmax.f32 %v1802_v2, 0.0  ;;  %v4865_v48 = vadd.f32 %v2181_v11, %v1817_v34  ;;  %v1819_v10 = vmax.f32 %v1803_v62, 0.0 }
 0x4b3   :  { %v2208_v50 = vadd.f32 %v2207_v29, %v4834_v43  ;;  %v2164_v58 = vadd.f32 %v4811_v59, %v2108_v36  ;;  %v4853_v30 = vadd.f32 %v2179_v61, %v1815_v23  ;;  %v2129_v54 = vadd.f32 %v3845_v51, %v4800_v27  ;;  %v3818_v23 = vpop.f32.mrf.mxu0 }
 0x4b4   :  { %v2120_v52 = vpop.f32.mrf.mxu1  ;;  %v2182_v20 = vmax.f32 %v2166_v45, 0.0  ;;  %v1804_v27 = vadd.f32 %v4805_v39, %v1760_v16  ;;  %v1806_v41 = vadd.f32 %v4805_v39, %v1768_v44  ;;  %v1773_v36 = vadd.f32 %v4792_v56, %v4772_v32 }
 0x4b5   :  { %v2209_v15 = vadd.f32 %v2208_v50, %v4843_v35  ;;  %v2121_v18 = vadd.f32 %v2120_v52, %v1975_v31  ;;  %v2180_v63 = vmax.f32 %v2164_v58, 0.0  ;;  %v2169_v8 = vadd.f32 %v4811_v59, %v2129_v54 }
 0x4b6   :  { %v3846_v33 = vpop.f32.mrf.mxu1  ;;  %v4874_v51 = vadd.f32 %v2182_v20, %v1818_v7  ;;  %v1820_v2 = vmax.f32 %v1804_v27, 0.0  ;;  %v1821_v56 = vmax.f32 %v1805_v28, 0.0  ;;  %v1807_v54 = vadd.f32 %v4805_v39, %v1773_v36 }
 0x4b7   :  { %v2210_v37 = vadd.f32 %v2209_v15, %v4853_v30  ;;  %v2167_v21 = vadd.f32 %v4811_v59, %v2121_v18  ;;  %v4862_v9 = vadd.f32 %v2180_v63, %v1816_v14  ;;  %v2132_v31 = vadd.f32 %v3846_v33, %v3814_v42  ;;  %v1994_v33 = vpop.f32.mrf.mxu0 }
 0x4b8   :  { %v2123_v25 = vpop.f32.mrf.mxu1  ;;  %v2185_v52 = vmax.f32 %v2169_v8, 0.0  ;;  %v1781_v14 = vadd.f32 %v4790_v1, %v4770_v47  ;;  %v1823_v7 = vmax.f32 %v1807_v54, 0.0 }
 0x4b9   :  { %v2124_v53 = vadd.f32 %v2123_v25, %v1978_v0  ;;  %v2211_v29 = vadd.f32 %v2210_v37, %v4862_v9  ;;  %v2183_v60 = vmax.f32 %v2167_v21, 0.0  ;;  %v2170_v12 = vadd.f32 %v4811_v59, %v2132_v31 }
 0x4ba   :  { %v3849_v61 = vpop.f32.mrf.mxu1  ;;  %v1822_v37 = vmax.f32 %v1806_v41, 0.0  ;;  %v1784_v21 = vadd.f32 %v4794_v4, %v4774_v46  ;;  %v2201_v20 = vadd.f32 %v2185_v52, %v1821_v56  ;;  %v1809_v31 = vadd.f32 %v4805_v39, %v1781_v14 }
 0x4bb   :  { %v2168_v42 = vadd.f32 %v4811_v59, %v2124_v53  ;;  %v2212_v0 = vadd.f32 %v2211_v29, %v4865_v48  ;;  %v2199_v16 = vadd.f32 %v2183_v60, %v1819_v10  ;;  %v2145_v18 = vadd.f32 %v3849_v61, %v3817_v55 }
 0x4bc   :  { %v2136_v50 = vpop.f32.mrf.mxu1  ;;  %v2186_v57 = vmax.f32 %v2170_v12, 0.0  ;;  %v1808_v55 = vadd.f32 %v4805_v39, %v1776_v26  ;;  %v1810_v46 = vadd.f32 %v4805_v39, %v1784_v21  ;;  %v1825_v41 = vmax.f32 %v1809_v31, 0.0 }
 0x4bd   :  { %v2184_v45 = vmax.f32 %v2168_v42, 0.0  ;;  %v2137_v58 = vadd.f32 %v2136_v50, %v1991_v13  ;;  %v2213_v15 = vadd.f32 %v2212_v0, %v4874_v51  ;;  %v2173_v47 = vadd.f32 %v4811_v59, %v2145_v18 }
 0x4be   :  { %v3850_v32 = vpop.f32.mrf.mxu1  ;;  %v2202_v27 = vadd.f32 %v2186_v57, %v1822_v37  ;;  %v1824_v8 = vmax.f32 %v1808_v55, 0.0  ;;  %v1826_v0 = vmax.f32 %v1810_v46, 0.0 }
 0x4bf   :  { %v2200_v11 = vadd.f32 %v2184_v45, %v1820_v2  ;;  %v2171_v63 = vadd.f32 %v4811_v59, %v2137_v58  ;;  %v2214_v62 = vadd.f32 %v2213_v15, %v2199_v16  ;;  %v2148_v22 = vadd.f32 %v3850_v32, %v3818_v23 }
 0x4c0   :  { %v2139_v44 = vpop.f32.mrf.mxu1  ;;  %v2189_v4 = vmax.f32 %v2173_v47, 0.0 }
 0x4c1   :  { %v2140_v34 = vadd.f32 %v2139_v44, %v1994_v33  ;;  %v2215_v13 = vadd.f32 %v2214_v62, %v2200_v11  ;;  %v2187_v1 = vmax.f32 %v2171_v63, 0.0  ;;  %v2174_v29 = vadd.f32 %v4811_v59, %v2148_v22 }
 0x4c2   :  { %v2205_v23 = vadd.f32 %v2189_v4, %v1825_v41 }
 0x4c3   :  { %v2172_v25 = vadd.f32 %v4811_v59, %v2140_v34  ;;  %v2216_v53 = vadd.f32 %v2215_v13, %v2201_v20  ;;  %v2203_v61 = vadd.f32 %v2187_v1, %v1823_v7  ;;  %v2190_v36 = vmax.f32 %v2174_v29, 0.0 }
 0x4c5   :  { %v2188_v60 = vmax.f32 %v2172_v25, 0.0  ;;  %v2217_v28 = vadd.f32 %v2216_v53, %v2202_v27  ;;  %v2206_v50 = vadd.f32 %v2190_v36, %v1826_v0 }
 0x4c7   :  { %v2204_v10 = vadd.f32 %v2188_v60, %v1824_v8  ;;  %v2218_v42 = vadd.f32 %v2217_v28, %v2203_v61 }
 0x4c9   :  { %v2219_v12 = vadd.f32 %v2218_v42, %v2204_v10 }
 0x4cb   :  { %v2220_v2 = vadd.f32 %v2219_v12, %v2205_v23 }
 0x4cd   :  { %v2221_v26 = vadd.f32 %v2220_v2, %v2206_v50 }
 0x4cf   :  { %v2222_v45 = vrot.slane %v2221_v26, 4 }
 0x4d1   :  { %v2223_v58 = vadd.f32 %v2222_v45, %v2221_v26 }
 0x4d3   :  { %v2224_v59 = vrot.slane %v2223_v58, 2 }
 0x4d5   :  { %v2225_v52 = vadd.f32 %v2224_v59, %v2223_v58 }
 0x4d7   :  { %v2226_v15 = vrot.slane %v2225_v52, 1 }
 0x4d9   :  { %v2227_v18 = vadd.f32 %v2226_v15, %v2225_v52 }
 0x4db   :  { %v2228_v39 = vmul.f32 0.0078125, %v2227_v18 }
 0x4dd   :  { %v2229_v32 = vsub.f32 %v4827_v3, %v2228_v39  ;;  %v2230_v56 = vsub.f32 %v4829_v24, %v2228_v39  ;;  %v2231_v14 = vsub.f32 %v4834_v43, %v2228_v39  ;;  %v2232_v63 = vsub.f32 %v4843_v35, %v2228_v39 }
 0x4de   :  { %v4898_v54 = vsub.f32 %v4853_v30, %v2228_v39  ;;  %v4901_v33 = vsub.f32 %v4862_v9, %v2228_v39  ;;  %v4904_v62 = vsub.f32 %v4865_v48, %v2228_v39  ;;  %v4907_v57 = vsub.f32 %v4874_v51, %v2228_v39 }
 0x4df   :  { %v4909_v22 = vsub.f32 %v2199_v16, %v2228_v39  ;;  %v4911_v3 = vsub.f32 %v2200_v11, %v2228_v39  ;;  %v2239_v24 = vsub.f32 %v2201_v20, %v2228_v39  ;;  %v2240_v43 = vsub.f32 %v2202_v27, %v2228_v39 }
 0x4e0   :  { %v2241_v44 = vsub.f32 %v2203_v61, %v2228_v39  ;;  %v2242_v35 = vsub.f32 %v2204_v10, %v2228_v39  ;;  %v2245_v37 = vmul.f32 %v2229_v32, %v2229_v32  ;;  %v2246_v30 = vmul.f32 %v2230_v56, %v2230_v56 }
 0x4e1   :  { %v2247_v21 = vmul.f32 %v2231_v14, %v2231_v14  ;;  %v2243_v9 = vsub.f32 %v2205_v23, %v2228_v39  ;;  %v2244_v34 = vsub.f32 %v2206_v50, %v2228_v39  ;;  %v2248_v13 = vmul.f32 %v2232_v63, %v2232_v63 }
 0x4e2   :  { %v2261_v55 = vadd.f32 %v2246_v30, %v2245_v37  ;;  %v2249_v51 = vmul.f32 %v4898_v54, %v4898_v54  ;;  %v2250_v16 = vmul.f32 %v4901_v33, %v4901_v33  ;;  %v2251_v20 = vmul.f32 %v4904_v62, %v4904_v62 }
 0x4e3   :  { %v2252_v31 = vmul.f32 %v4907_v57, %v4907_v57  ;;  %v2253_v7 = vmul.f32 %v4909_v22, %v4909_v22  ;;  %v2254_v53 = vmul.f32 %v4911_v3, %v4911_v3  ;;  %v2255_v8 = vmul.f32 %v2239_v24, %v2239_v24 }
 0x4e4   :  { %v2262_v48 = vadd.f32 %v2261_v55, %v2247_v21  ;;  %v2256_v46 = vmul.f32 %v2240_v43, %v2240_v43  ;;  %v2257_v61 = vmul.f32 %v2241_v44, %v2241_v44  ;;  %v2258_v10 = vmul.f32 %v2242_v35, %v2242_v35 }
 0x4e5   :  { %v2259_v36 = vmul.f32 %v2243_v9, %v2243_v9  ;;  %v2260_v0 = vmul.f32 %v2244_v34, %v2244_v34 }
 0x4e6   :  { %v2263_v47 = vadd.f32 %v2262_v48, %v2248_v13 }
 0x4e8   :  { %v2264_v11 = vadd.f32 %v2263_v47, %v2249_v51 }
 0x4ea   :  { %v2265_v1 = vadd.f32 %v2264_v11, %v2250_v16 }
 0x4ec   :  { %v2266_v25 = vadd.f32 %v2265_v1, %v2251_v20 }
 0x4ee   :  { %v2267_v27 = vadd.f32 %v2266_v25, %v2252_v31 }
 0x4f0   :  { %v2268_v29 = vadd.f32 %v2267_v27, %v2253_v7  ;;  %v4117_v27 = vld [vmem:[#allocation11 + $0x68] sm:$0xff]  }
 0x4f2   :  { %v2269_v60 = vadd.f32 %v2268_v29, %v2254_v53  ;;  %v4118_v53 = vld [vmem:[#allocation11 + $0x10] sm:$0xff]   ;;  %v4119_v29 = vld [vmem:[#allocation11 + $0x8] sm:$0xff]  }
 0x4f4   :  { %v2270_v4 = vadd.f32 %v2269_v60, %v2255_v8  ;;  %v4120_v8 = vld [vmem:[#allocation11 + $0x60] sm:$0xff]  }
 0x4f5   :  { %v4121_v60 = vld [vmem:[#allocation11] sm:$0xff]  }
 0x4f6   :  { %v2271_v28 = vadd.f32 %v2270_v4, %v2256_v46  ;;  %v4122_v46 = vld [vmem:[#allocation11 + $0x58] sm:$0xff]   ;;  %v4123_v4 = vld [vmem:[#allocation11 + $0x50] sm:$0xff]  }
 0x4f8   :  { %v2272_v41 = vadd.f32 %v2271_v28, %v2257_v61  ;;  %v4124_v61 = vld [vmem:[#allocation11 + $0x48] sm:$0xff]   ;;  %v4125_v28 = vld [vmem:[#allocation11 + $0x40] sm:$0xff]  }
 0x4fa   :  { %v2273_v42 = vadd.f32 %v2272_v41, %v2258_v10 }
 0x4fc   :  { %v2274_v23 = vadd.f32 %v2273_v42, %v2259_v36 }
 0x4fe   :  { %v2275_v12 = vadd.f32 %v2274_v23, %v2260_v0 }
 0x500   :  { %v2276_v50 = vrot.slane %v2275_v12, 4 }
 0x502   :  { %v2277_v2 = vadd.f32 %v2276_v50, %v2275_v12 }
 0x504   :  { %v2278_v26 = vrot.slane %v2277_v2, 2 }
 0x506   :  { %v2279_v45 = vadd.f32 %v2278_v26, %v2277_v2 }
 0x508   :  { %v2280_v58 = vrot.slane %v2279_v45, 1 }
 0x50a   :  { %v2281_v59 = vadd.f32 %v2280_v58, %v2279_v45 }
 0x50c   :  { %v2282_v52 = vmul.f32 0.0078125, %v2281_v59 }
 0x50e   :  { %v2283_v15 = vadd.f32 1e-05, %v2282_v52 }
 0x510   :  { %4128 = vrsqrt.f32 %v2283_v15 }
 0x51d   :  { %v4129_v18 = vpop.eup %4128 }
 0x51e   :  { %v2299_v39 = vmul.f32 %v4129_v18, %v2243_v9  ;;  %v2300_v37 = vmul.f32 %v4129_v18, %v2244_v34  ;;  %v2285_v30 = vmul.f32 %v4129_v18, %v2229_v32  ;;  %v2286_v21 = vmul.f32 %v4129_v18, %v2230_v56  ;;  %v4116_v34 = vld [vmem:[#allocation11 + $0x18] sm:$0xff]  }
 0x51f   :  { %v2287_v55 = vmul.f32 %v4129_v18, %v2231_v14  ;;  %v2288_v13 = vmul.f32 %v4129_v18, %v2232_v63  ;;  %v2297_v48 = vmul.f32 %v4129_v18, %v2241_v44  ;;  %v2298_v51 = vmul.f32 %v4129_v18, %v2242_v35  ;;  %v4147_v35 = vld [vmem:[#allocation2 + $0x78] sm:$0xff]  }
 0x520   :  { %v2308_v47 = vpack.c.bf16 %v2300_v37, %v2299_v39  ;;  %v2301_v16 = vpack.c.bf16 %v2286_v21, %v2285_v30  ;;  %v2289_v11 = vmul.f32 %v4129_v18, %v4898_v54  ;;  %v2290_v20 = vmul.f32 %v4129_v18, %v4901_v33 }
 0x521   :  { %v2302_v1 = vpack.c.bf16 %v2288_v13, %v2287_v55  ;;  %v2307_v31 = vpack.c.bf16 %v2298_v51, %v2297_v48  ;;  %v2295_v25 = vmul.f32 %v4129_v18, %v2239_v24  ;;  %v2296_v7 = vmul.f32 %v4129_v18, %v2240_v43  ;;  %v4114_v24 = vld [vmem:[#allocation11 + $0x70] sm:$0xff]   ;;  %v4115_v43 = vld [vmem:[#allocation11 + $0x20] sm:$0xff]  }
 0x522   :  { %3851 = vmatprep.subr.bf16.mxu0 %v2308_v47  ;;  %3915 = vmatprep.mubr.bf16.mxu1 %v2301_v16  ;;  %v2303_v9 = vpack.c.bf16 %v2290_v20, %v2289_v11  ;;  %v2291_v32 = vmul.f32 %v4129_v18, %v4904_v62  ;;  %v2292_v56 = vmul.f32 %v4129_v18, %v4907_v57  ;;  %v5040_v62 = vld [vmem:[#allocation19_spill] sm:$0xff]  ;;  %v5041_v57 = vld [vmem:[#allocation20_spill] sm:$0xff] }
 0x523   :  { %3852 = vmatpush3.bf16.msra.mxu0 %v2308_v47  ;;  %3916 = vmatmul.mubr.bf16.vlgmr.msra.gmra.mxu1 %v2302_v1  ;;  %v2306_v14 = vpack.c.bf16 %v2296_v7, %v2295_v25  ;;  %v2293_v63 = vmul.f32 %v4129_v18, %v4909_v22  ;;  %v2294_v54 = vmul.f32 %v4129_v18, %v4911_v3  ;;  %v5042_v22 = vld [vmem:[#allocation21_spill] sm:$0xff]  ;;  %v5043_v3 = vld [vmem:[#allocation22_spill] sm:$0xff] }
 0x524   :  { %3853 = vmatprep.subr.bf16.mxu0 %v2307_v31  ;;  %3919 = vmatprep.mubr.bf16.mxu1 %v2303_v9  ;;  %v2304_v33 = vpack.c.bf16 %v2292_v56, %v2291_v32 }
 0x525   :  { %v2305_v44 = vpack.c.bf16 %v2294_v54, %v2293_v63 }
 0x527   :  { %3854 = vmatpush3.bf16.msra.mxu0 %v2307_v31 }
 0x528   :  { %3855 = vmatprep.subr.bf16.mxu0 %v2306_v14 }
 0x52b   :  { %3856 = vmatpush3.bf16.msra.mxu0 %v2306_v14  ;;  %3920 = vmatmul.mubr.bf16.gmra.mxu1 %v2304_v33 }
 0x52c   :  { %3857 = vmatprep.subr.bf16.mxu0 %v2305_v44  ;;  %3923 = vmatprep.mubr.bf16.mxu1 %v2305_v44 }
 0x52f   :  { %3858 = vmatpush3.bf16.msra.mxu0 %v2305_v44 }
 0x530   :  { %3859 = vmatprep.subr.bf16.mxu0 %v2304_v33 }
 0x533   :  { %3860 = vmatpush3.bf16.msra.mxu0 %v2304_v33  ;;  %3924 = vmatmul.mubr.bf16.gmra.mxu1 %v2306_v14 }
 0x534   :  { %3861 = vmatprep.subr.bf16.mxu0 %v2303_v9  ;;  %3927 = vmatprep.mubr.bf16.mxu1 %v2307_v31 }
 0x537   :  { %3862 = vmatpush3.bf16.msra.mxu0 %v2303_v9 }
 0x538   :  { %3863 = vmatprep.subr.bf16.mxu0 %v2302_v1 }
 0x53b   :  { %3864 = vmatpush3.bf16.msra.mxu0 %v2302_v1  ;;  %3928 = vmatmul.mubr.bf16.gmra.mxu1 %v2308_v47 }
 0x53c   :  { %3865 = vmatprep.subr.bf16.mxu0 %v2301_v16 }
 0x53f   :  { %3866 = vmatpush3.bf16.msra.mxu0 %v2301_v16 }
 0x542   :  { %3868 = vmatmul.mubr.bf16.vlgmr.msra.gmra.mxu0 %v4691_v17  ;;  %v5044_v17 = vld [vmem:[#allocation23_spill] sm:$0xff] }
 0x543   :  { %3871 = vmatprep.mubr.bf16.mxu0 %v4694_v19  ;;  %v4110_v19 = vld [vmem:[#allocation11 + $0x38] sm:$0xff]  }
 0x544   :  { %3931 = vmatprep.subr.bf16.mxu1 %v4110_v19 }
 0x545   :  { %3932 = vmatpush3.bf16.msra.mxu1 %v4110_v19 }
 0x54a   :  { %3872 = vmatmul.mubr.bf16.gmra.mxu0 %v4697_v40  ;;  %v4943_v40 = vld [vmem:[#allocation11 + $0x78] sm:$0xff]  }
 0x54b   :  { %3875 = vmatprep.mubr.bf16.mxu0 %v4700_v6  ;;  %3963 = vmatprep.subr.bf16.mxu0 %v4943_v40  ;;  %v4112_v6 = vld [vmem:[#allocation11 + $0x30] sm:$0xff]  }
 0x54c   :  { %3964 = vmatpush3.bf16.msra.mxu0 %v4943_v40  ;;  %3933 = vmatprep.subr.bf16.mxu1 %v4112_v6 }
 0x54d   :  { %3934 = vmatpush3.bf16.msra.mxu1 %v4112_v6  ;;  %3965 = vmatprep.subr.bf16.mxu0 %v4114_v24 }
 0x550   :  { %3966 = vmatpush3.bf16.msra.mxu0 %v4114_v24 }
 0x551   :  { %3967 = vmatprep.subr.bf16.mxu0 %v4117_v27 }
 0x552   :  { %3876 = vmatmul.mubr.bf16.gmra.mxu0 %v4703_v38  ;;  %v4145_v38 = vld [vmem:[#allocation2 + $0x68] sm:$0xff]  }
 0x553   :  { %3879 = vmatprep.mubr.bf16.mxu0 %v4706_v49  ;;  %v4146_v49 = vld [vmem:[#allocation2 + $0x70] sm:$0xff]  }
 0x554   :  { %3968 = vmatpush3.bf16.msra.mxu0 %v4117_v27 }
 0x555   :  { %3969 = vmatprep.subr.bf16.mxu0 %v4120_v8 }
 0x558   :  { %3970 = vmatpush3.bf16.msra.mxu0 %v4120_v8 }
 0x559   :  { %3971 = vmatprep.subr.bf16.mxu0 %v4122_v46 }
 0x55a   :  { %3880 = vmatmul.mubr.bf16.gmra.mxu0 %v4709_v5  ;;  %v4113_v5 = vld [vmem:[#allocation11 + $0x28] sm:$0xff]  }
 0x55b   :  { %3883 = vmatprep.mubr.bf16.mxu0 %v5040_v62  ;;  %3935 = vmatprep.subr.bf16.mxu1 %v4113_v5 }
 0x55c   :  { %3936 = vmatpush3.bf16.msra.mxu1 %v4113_v5  ;;  %3972 = vmatpush3.bf16.msra.mxu0 %v4122_v46 }
 0x55d   :  { %3937 = vmatprep.subr.bf16.mxu1 %v4115_v43  ;;  %3973 = vmatprep.subr.bf16.mxu0 %v4123_v4 }
 0x560   :  { %3938 = vmatpush3.bf16.msra.mxu1 %v4115_v43  ;;  %3974 = vmatpush3.bf16.msra.mxu0 %v4123_v4 }
 0x561   :  { %3939 = vmatprep.subr.bf16.mxu1 %v4116_v34  ;;  %3975 = vmatprep.subr.bf16.mxu0 %v4124_v61 }
 0x562   :  { %3884 = vmatmul.mubr.bf16.gmra.mxu0 %v5041_v57 }
 0x563   :  { %3887 = vmatprep.mubr.bf16.mxu0 %v5042_v22 }
 0x564   :  { %3940 = vmatpush3.bf16.msra.mxu1 %v4116_v34  ;;  %3976 = vmatpush3.bf16.msra.mxu0 %v4124_v61 }
 0x565   :  { %3941 = vmatprep.subr.bf16.mxu1 %v4118_v53  ;;  %3977 = vmatprep.subr.bf16.mxu0 %v4125_v28 }
 0x568   :  { %3942 = vmatpush3.bf16.msra.mxu1 %v4118_v53  ;;  %3978 = vmatpush3.bf16.msra.mxu0 %v4125_v28 }
 0x569   :  { %3943 = vmatprep.subr.bf16.mxu1 %v4119_v29 }
 0x56a   :  { %3888 = vmatmul.mubr.bf16.gmra.mxu0 %v5043_v3 }
 0x56b   :  { %3891 = vmatprep.mubr.bf16.mxu0 %v5044_v17 }
 0x56c   :  { %3944 = vmatpush3.bf16.msra.mxu1 %v4119_v29 }
 0x56d   :  { %3945 = vmatprep.subr.bf16.mxu1 %v4121_v60 }
 0x570   :  { %3946 = vmatpush3.bf16.msra.mxu1 %v4121_v60 }
 0x571   :  { %3995 = vmatprep.subr.bf16.mxu1 %v4943_v40 }
 0x572   :  { %3892 = vmatmul.mubr.bf16.gmra.mxu0 %v4145_v38 }
 0x573   :  { %3895 = vmatprep.mubr.bf16.mxu0 %v4146_v49 }
 0x57a   :  { %3896 = vmatmul.mubr.bf16.gmra.mxu0 %v4147_v35 }
 0x5e3   :  { %v3917_v38 = vpop.f32.mrf.mxu1 }
 0x5e5   :  { %v2591_v49 = vpop.f32.mrf.mxu1 }
 0x5e7   :  { %v3918_v5 = vpop.f32.mrf.mxu1 }
 0x602   :  { %v3869_v10 = vpop.f32.mrf.mxu0 }
 0x604   :  { %v2343_v41 = vpop.f32.mrf.mxu0 }
 0x606   :  { %v3870_v42 = vpop.f32.mrf.mxu0 }
 0x607   :  { %v2471_v23 = vpack.c.bf16 %v3870_v42, %v3869_v10 }
 0x608   :  { %v2346_v36 = vpop.f32.mrf.mxu0 }
 0x609   :  { %v2470_v0 = vpack.c.bf16 %v2346_v36, %v2343_v41 }
 0x60a   :  { %v3873_v12 = vpop.f32.mrf.mxu0 }
 0x60b   :  { %3947 = vmatprep.mubr.bf16.mxu1 %v2470_v0 }
 0x60c   :  { %v2359_v50 = vpop.f32.mrf.mxu0  ;;  %3948 = vmatmul.mubr.bf16.vlgmr.msra.gmra.mxu1 %v2471_v23 }
 0x60d   :  { %4003 = vmatpush3.bf16.msra.mxu1 %v4943_v40 }
 0x60e   :  { %v3874_v2 = vpop.f32.mrf.mxu0  ;;  %3996 = vmatprep.subr.bf16.mxu1 %v4114_v24 }
 0x60f   :  { %v2473_v58 = vpack.c.bf16 %v3874_v2, %v3873_v12 }
 0x610   :  { %v2362_v26 = vpop.f32.mrf.mxu0 }
 0x611   :  { %v2472_v45 = vpack.c.bf16 %v2362_v26, %v2359_v50  ;;  %4004 = vmatpush3.bf16.msra.mxu1 %v4114_v24  ;;  %v2594_v24 = vpop.f32.mrf.mxu1 }
 0x612   :  { %v3877_v59 = vpop.f32.mrf.mxu0  ;;  %3997 = vmatprep.subr.bf16.mxu1 %v4117_v27 }
 0x613   :  { %3951 = vmatprep.mubr.bf16.mxu1 %v2472_v45  ;;  %v3921_v43 = vpop.f32.mrf.mxu1 }
 0x614   :  { %v2375_v52 = vpop.f32.mrf.mxu0  ;;  %3952 = vmatmul.mubr.bf16.gmra.mxu1 %v2473_v58 }
 0x615   :  { %4005 = vmatpush3.bf16.msra.mxu1 %v4117_v27  ;;  %v2607_v35 = vpop.f32.mrf.mxu1 }
 0x616   :  { %v3878_v15 = vpop.f32.mrf.mxu0  ;;  %3998 = vmatprep.subr.bf16.mxu1 %v4120_v8 }
 0x617   :  { %v2475_v37 = vpack.c.bf16 %v3878_v15, %v3877_v59  ;;  %v3922_v34 = vpop.f32.mrf.mxu1 }
 0x618   :  { %v2378_v18 = vpop.f32.mrf.mxu0 }
 0x619   :  { %v2474_v39 = vpack.c.bf16 %v2378_v18, %v2375_v52  ;;  %4006 = vmatpush3.bf16.msra.mxu1 %v4120_v8  ;;  %v2610_v27 = vpop.f32.mrf.mxu1  ;;  %v4964_v52 = vld [vmem:[%s5028_s7] ss:$0 sm:$0xff]  ;;  %s4308_s7 = smov [#allocation13]  }
 0x61a   :  { %v3881_v30 = vpop.f32.mrf.mxu0  ;;  %3999 = vmatprep.subr.bf16.mxu1 %v4122_v46  ;;  %s3124_s21 = sshll.u32 %s4308_s7, 4  ;;  %s3125_s21 = int_to_ptr.vmem [resolvable:$true] %s3124_s21 }
 0x61b   :  { %3955 = vmatprep.mubr.bf16.mxu1 %v2474_v39  ;;  %v4949_v53 = vpop.f32.mrf.mxu1  ;;  %v2592_v39 = vadd.f32 %v4964_v52, %v2591_v49  ;;  %s4268_s22 = scalar_lea.vmem %s3125_s21, 2048  ;;  %p4273_p3 = scmp.lt.s32.totalorder %s3125_s21, %s3125_s21 }
 0x61c   :  { %v2391_v21 = vpop.f32.mrf.mxu0  ;;  %3956 = vmatmul.mubr.bf16.gmra.mxu1 %v2475_v37  ;;  %v2595_v37 = vadd.f32 %v4964_v52, %v2594_v24  ;;  %p4269_p2 = scmp.ne.s32.totalorder %s3125_s21, %s4268_s22  ;;  %p4274_p4 = scmp.lt.s32.totalorder %s4268_s22, %s4268_s22 }
 0x61d   :  { %4007 = vmatpush3.bf16.msra.mxu1 %v4122_v46  ;;  %v2623_v29 = vpop.f32.mrf.mxu1 }
 0x61e   :  { %v3882_v55 = vpop.f32.mrf.mxu0  ;;  %4000 = vmatprep.subr.bf16.mxu1 %v4123_v4  ;;  %v2624_v24 = vadd.f32 %v4964_v52, %v2623_v29  ;;  %p4275_p5 = por %p4274_p4, %p4273_p3 }
 0x61f   :  { %v2477_v51 = vpack.c.bf16 %v3882_v55, %v3881_v30  ;;  %v4951_v8 = vpop.f32.mrf.mxu1 }
 0x620   :  { %v2394_v13 = vpop.f32.mrf.mxu0  ;;  %v2635_v29 = vadd.f32 %v4951_v8, %v4964_v52  ;;  %p4276_p6 = pnand %p4275_p5, %p4269_p2 }
 0x621   :  { %v2476_v48 = vpack.c.bf16 %v2394_v13, %v2391_v21  ;;  %4008 = vmatpush3.bf16.msra.mxu1 %v4123_v4  ;;  %v2626_v60 = vpop.f32.mrf.mxu1  ;;  %v2600_v21 = vadd.f32 %v3917_v38, %v4964_v52 }
 0x622   :  { %v3885_v47 = vpop.f32.mrf.mxu0  ;;  %4001 = vmatprep.subr.bf16.mxu1 %v4124_v61 }
 0x623   :  { %3959 = vmatprep.mubr.bf16.mxu1 %v2476_v48  ;;  %v4953_v46 = vpop.f32.mrf.mxu1 }
 0x624   :  { %v2407_v16 = vpop.f32.mrf.mxu0  ;;  %3960 = vmatmul.mubr.bf16.gmra.mxu1 %v2477_v51  ;;  %v2648_v8 = vadd.f32 %v4953_v46, %v4964_v52 }
 0x625   :  { %4009 = vmatpush3.bf16.msra.mxu1 %v4124_v61  ;;  %v4955_v4 = vpop.f32.mrf.mxu1 }
 0x626   :  { %v3886_v11 = vpop.f32.mrf.mxu0  ;;  %4002 = vmatprep.subr.bf16.mxu1 %v4125_v28 }
 0x627   :  { %v2479_v31 = vpack.c.bf16 %v3886_v11, %v3885_v47  ;;  %v4957_v61 = vpop.f32.mrf.mxu1  ;;  %v2603_v47 = vadd.f32 %v3918_v5, %v4964_v52 }
 0x628   :  { %v2410_v20 = vpop.f32.mrf.mxu0 }
 0x629   :  { %v2478_v1 = vpack.c.bf16 %v2410_v20, %v2407_v16  ;;  %4010 = vmatpush3.bf16.msra.mxu1 %v4125_v28  ;;  %v4959_v28 = vpop.f32.mrf.mxu1 }
 0x62a   :  { %v3889_v25 = vpop.f32.mrf.mxu0 }
 0x62b   :  { %3979 = vmatprep.mubr.bf16.mxu0 %v2478_v1 }
 0x62c   :  { %v2423_v7 = vpop.f32.mrf.mxu0  ;;  %3980 = vmatmul.mubr.bf16.vlgmr.msra.gmra.mxu0 %v2479_v31  ;;  %v2608_v31 = vadd.f32 %v4964_v52, %v2607_v35 }
 0x62e   :  { %v3890_v9 = vpop.f32.mrf.mxu0 }
 0x62f   :  { %v2481_v14 = vpack.c.bf16 %v3890_v9, %v3889_v25 }
 0x630   :  { %v2426_v32 = vpop.f32.mrf.mxu0 }
 0x631   :  { %v2480_v56 = vpack.c.bf16 %v2426_v32, %v2423_v7 }
 0x632   :  { %v3893_v63 = vpop.f32.mrf.mxu0 }
 0x633   :  { %3983 = vmatprep.mubr.bf16.mxu0 %v2480_v56 }
 0x634   :  { %v2439_v54 = vpop.f32.mrf.mxu0  ;;  %3984 = vmatmul.mubr.bf16.gmra.mxu0 %v2481_v14  ;;  %v2611_v14 = vadd.f32 %v4964_v52, %v2610_v27 }
 0x636   :  { %v3894_v33 = vpop.f32.mrf.mxu0 }
 0x637   :  { %v2483_v57 = vpack.c.bf16 %v3894_v33, %v3893_v63 }
 0x638   :  { %v2442_v44 = vpop.f32.mrf.mxu0 }
 0x639   :  { %v2482_v62 = vpack.c.bf16 %v2442_v44, %v2439_v54 }
 0x63a   :  { %v3897_v22 = vpop.f32.mrf.mxu0 }
 0x63b   :  { %3987 = vmatprep.mubr.bf16.mxu1 %v2482_v62  ;;  %v2616_v62 = vadd.f32 %v3921_v43, %v4964_v52 }
 0x63c   :  { %v2455_v3 = vpop.f32.mrf.mxu0  ;;  %3988 = vmatmul.mubr.bf16.vlgmr.msra.gmra.mxu1 %v2483_v57 }
 0x63e   :  { %v3898_v17 = vpop.f32.mrf.mxu0 }
 0x63f   :  { %v2485_v6 = vpack.c.bf16 %v3898_v17, %v3897_v22 }
 0x640   :  { %v2458_v19 = vpop.f32.mrf.mxu0 }
 0x641   :  { %v2484_v40 = vpack.c.bf16 %v2458_v19, %v2455_v3 }
 0x643   :  { %3991 = vmatprep.mubr.bf16.mxu1 %v2484_v40  ;;  %v2619_v40 = vadd.f32 %v3922_v34, %v4964_v52  ;;  %v2632_v34 = vadd.f32 %v4949_v53, %v4964_v52  ;;  %v2643_v53 = vadd.f32 %v4964_v52, %v4959_v28 }
 0x644   :  { %3992 = vmatmul.mubr.bf16.gmra.mxu1 %v2485_v6 }
 0x6cc   :  { %v3949_v10 = vpop.f32.mrf.mxu1 }
 0x6cd   :  { %v2817_v16 = vadd.f32 %v3949_v10, %v2600_v21 }
 0x6ce   :  { %v2752_v41 = vpop.f32.mrf.mxu1 }
 0x6cf   :  { %v2815_v55 = vadd.f32 %v2752_v41, %v2592_v39  ;;  %v2627_v41 = vadd.f32 %v4964_v52, %v2626_v60  ;;  %v2640_v60 = vadd.f32 %v4964_v52, %v4955_v4  ;;  %v2651_v4 = vadd.f32 %v4957_v61, %v4964_v52 }
 0x6d0   :  { %v3950_v42 = vpop.f32.mrf.mxu1 }
 0x6d1   :  { %v2818_v25 = vadd.f32 %v3950_v42, %v2603_v47 }
 0x6d2   :  { %v2755_v36 = vpop.f32.mrf.mxu1 }
 0x6d3   :  { %v2816_v13 = vadd.f32 %v2755_v36, %v2595_v37 }
 0x6d4   :  { %v3953_v0 = vpop.f32.mrf.mxu1 }
 0x6d5   :  { %v2821_v6 = vadd.f32 %v3953_v0, %v2616_v62 }
 0x6d6   :  { %v2768_v23 = vpop.f32.mrf.mxu1 }
 0x6d7   :  { %v2819_v63 = vadd.f32 %v2768_v23, %v2608_v31 }
 0x6d8   :  { %v3954_v12 = vpop.f32.mrf.mxu1 }
 0x6d9   :  { %v2822_v35 = vadd.f32 %v3954_v12, %v2619_v40 }
 0x6da   :  { %v2771_v50 = vpop.f32.mrf.mxu1 }
 0x6db   :  { %v2820_v57 = vadd.f32 %v2771_v50, %v2611_v14 }
 0x6dc   :  { %v3957_v2 = vpop.f32.mrf.mxu1 }
 0x6dd   :  { %v2825_v12 = vadd.f32 %v3957_v2, %v2632_v34 }
 0x6de   :  { %v2784_v26 = vpop.f32.mrf.mxu1 }
 0x6df   :  { %v2823_v42 = vadd.f32 %v2784_v26, %v2624_v24 }
 0x6e0   :  { %v3958_v45 = vpop.f32.mrf.mxu1 }
 0x6e1   :  { %v2826_v26 = vadd.f32 %v3958_v45, %v2635_v29 }
 0x6e2   :  { %v2787_v58 = vpop.f32.mrf.mxu1 }
 0x6e3   :  { %v2824_v0 = vadd.f32 %v2787_v58, %v2627_v41 }
 0x6e4   :  { %v4966_v15 = vpop.f32.mrf.mxu1 }
 0x6e5   :  { %v2829_v45 = vadd.f32 %v4966_v15, %v2648_v8 }
 0x6e6   :  { %v2800_v48 = vpop.f32.mrf.mxu1 }
 0x6e7   :  { %v2827_v58 = vadd.f32 %v2800_v48, %v2640_v60 }
 0x6e8   :  { %v3962_v32 = vpop.f32.mrf.mxu1 }
 0x6ea   :  { %v2803_v17 = vpop.f32.mrf.mxu1 }
 0x6eb   :  { %v2828_v2 = vadd.f32 %v2803_v17, %v2643_v53 }
 0x6ec   :  { %v3981_v59 = vpop.f32.mrf.mxu0 }
 0x6ed   :  { %v4977_v7 = vadd.f32 %v3981_v59, %v2817_v16 }
 0x6ee   :  { %v2930_v18 = vpop.f32.mrf.mxu0 }
 0x6ef   :  { %v4972_v11 = vadd.f32 %v2930_v18, %v2815_v55 }
 0x6f0   :  { %v3982_v30 = vpop.f32.mrf.mxu0 }
 0x6f1   :  { %v4982_v54 = vadd.f32 %v3982_v30, %v2818_v25 }
 0x6f2   :  { %v2933_v51 = vpop.f32.mrf.mxu0 }
 0x6f3   :  { %v4974_v20 = vadd.f32 %v2933_v51, %v2816_v13 }
 0x6f4   :  { %v3985_v1 = vpop.f32.mrf.mxu0 }
 0x6f5   :  { %v3009_v9 = vadd.f32 %v4974_v20, %v4972_v11  ;;  %v2999_v27 = vadd.f32 %v3985_v1, %v2821_v6 }
 0x6f6   :  { %v2946_v56 = vpop.f32.mrf.mxu0 }
 0x6f7   :  { %v3010_v33 = vadd.f32 %v3009_v9, %v4977_v7  ;;  %v4986_v22 = vadd.f32 %v2946_v56, %v2819_v63  ;;  %v2830_v63 = vadd.f32 %v3962_v32, %v2651_v4 }
 0x6f8   :  { %v3986_v44 = vpop.f32.mrf.mxu0 }
 0x6f9   :  { %v3011_v3 = vadd.f32 %v3010_v33, %v4982_v54  ;;  %v3000_v36 = vadd.f32 %v3986_v44, %v2822_v35 }
 0x6fa   :  { %v2949_v19 = vpop.f32.mrf.mxu0 }
 0x6fb   :  { %v3012_v38 = vadd.f32 %v3011_v3, %v4986_v22  ;;  %v4991_v49 = vadd.f32 %v2949_v19, %v2820_v57 }
 0x6fc   :  { %v3989_v5 = vpop.f32.mrf.mxu1 }
 0x6fd   :  { %v3013_v43 = vadd.f32 %v3012_v38, %v4991_v49  ;;  %v3003_v55 = vadd.f32 %v3989_v5, %v2825_v12 }
 0x6fe   :  { %v2962_v10 = vpop.f32.mrf.mxu1 }
 0x6ff   :  { %v3014_v23 = vadd.f32 %v3013_v43, %v2999_v27  ;;  %v3001_v59 = vadd.f32 %v2962_v10, %v2823_v42 }
 0x700   :  { %v3990_v50 = vpop.f32.mrf.mxu1 }
 0x701   :  { %v3015_v18 = vadd.f32 %v3014_v23, %v3000_v36  ;;  %v3004_v47 = vadd.f32 %v3990_v50, %v2826_v26 }
 0x702   :  { %v2965_v39 = vpop.f32.mrf.mxu1 }
 0x703   :  { %v3016_v37 = vadd.f32 %v3015_v18, %v3001_v59  ;;  %v3002_v30 = vadd.f32 %v2965_v39, %v2824_v0 }
 0x704   :  { %v3993_v21 = vpop.f32.mrf.mxu1 }
 0x705   :  { %v3017_v13 = vadd.f32 %v3016_v37, %v3002_v30  ;;  %v3007_v28 = vadd.f32 %v3993_v21, %v2829_v45 }
 0x706   :  { %v2978_v51 = vpop.f32.mrf.mxu1 }
 0x707   :  { %v3018_v16 = vadd.f32 %v3017_v13, %v3003_v55  ;;  %v3005_v31 = vadd.f32 %v2978_v51, %v2827_v58 }
 0x708   :  { %v3994_v1 = vpop.f32.mrf.mxu1 }
 0x709   :  { %v3019_v25 = vadd.f32 %v3018_v16, %v3004_v47  ;;  %v3008_v33 = vadd.f32 %v3994_v1, %v2830_v63 }
 0x70a   :  { %v2981_v9 = vpop.f32.mrf.mxu1 }
 0x70b   :  { %v3020_v56 = vadd.f32 %v3019_v25, %v3005_v31  ;;  %v3006_v14 = vadd.f32 %v2981_v9, %v2828_v2 }
 0x70d   :  { %v3021_v48 = vadd.f32 %v3020_v56, %v3006_v14 }
 0x70f   :  { %v3022_v44 = vadd.f32 %v3021_v48, %v3007_v28 }
 0x711   :  { %v3023_v62 = vadd.f32 %v3022_v44, %v3008_v33 }
 0x713   :  { %v3024_v57 = vrot.slane %v3023_v62, 4 }
 0x715   :  { %v3025_v3 = vadd.f32 %v3024_v57, %v3023_v62 }
 0x717   :  { %v3026_v46 = vrot.slane %v3025_v3, 2 }
 0x719   :  { %v3027_v17 = vadd.f32 %v3026_v46, %v3025_v3 }
 0x71b   :  { %v3028_v19 = vrot.slane %v3027_v17, 1 }
 0x71d   :  { %v3029_v40 = vadd.f32 %v3028_v19, %v3027_v17 }
 0x71f   :  { %v3030_v6 = vmul.f32 0.0078125, %v3029_v40 }
 0x721   :  { %v3031_v38 = vsub.f32 %v4972_v11, %v3030_v6  ;;  %v3032_v61 = vsub.f32 %v4974_v20, %v3030_v6  ;;  %v3033_v52 = vsub.f32 %v4977_v7, %v3030_v6  ;;  %v3034_v5 = vsub.f32 %v4982_v54, %v3030_v6 }
 0x722   :  { %v3035_v24 = vsub.f32 %v4986_v22, %v3030_v6  ;;  %v3036_v10 = vsub.f32 %v4991_v49, %v3030_v6  ;;  %v3037_v23 = vsub.f32 %v2999_v27, %v3030_v6  ;;  %v3038_v11 = vsub.f32 %v3000_v36, %v3030_v6 }
 0x723   :  { %v3047_v15 = vmul.f32 %v3031_v38, %v3031_v38  ;;  %v3048_v32 = vmul.f32 %v3032_v61, %v3032_v61  ;;  %v3049_v35 = vmul.f32 %v3033_v52, %v3033_v52  ;;  %v3050_v41 = vmul.f32 %v3034_v5, %v3034_v5 }
 0x724   :  { %v3051_v50 = vmul.f32 %v3035_v24, %v3035_v24  ;;  %v3052_v0 = vmul.f32 %v3036_v10, %v3036_v10  ;;  %v3039_v18 = vsub.f32 %v3001_v59, %v3030_v6  ;;  %v3053_v7 = vmul.f32 %v3037_v23, %v3037_v23 }
 0x725   :  { %v3063_v43 = vadd.f32 %v3048_v32, %v3047_v15  ;;  %v3040_v29 = vsub.f32 %v3002_v30, %v3030_v6  ;;  %v3054_v12 = vmul.f32 %v3038_v11, %v3038_v11  ;;  %v3041_v37 = vsub.f32 %v3003_v55, %v3030_v6 }
 0x726   :  { %v3055_v22 = vmul.f32 %v3039_v18, %v3039_v18  ;;  %v3042_v60 = vsub.f32 %v3004_v47, %v3030_v6  ;;  %v3043_v13 = vsub.f32 %v3005_v31, %v3030_v6  ;;  %v3044_v53 = vsub.f32 %v3006_v14, %v3030_v6 }
 0x727   :  { %v3064_v42 = vadd.f32 %v3063_v43, %v3049_v35  ;;  %v3056_v26 = vmul.f32 %v3040_v29, %v3040_v29  ;;  %v3057_v51 = vmul.f32 %v3041_v37, %v3041_v37  ;;  %v3045_v16 = vsub.f32 %v3007_v28, %v3030_v6 }
 0x728   :  { %v3058_v58 = vmul.f32 %v3042_v60, %v3042_v60  ;;  %v3059_v1 = vmul.f32 %v3043_v13, %v3043_v13  ;;  %v3046_v8 = vsub.f32 %v3008_v33, %v3030_v6  ;;  %v3060_v2 = vmul.f32 %v3044_v53, %v3044_v53 }
 0x729   :  { %v3065_v34 = vadd.f32 %v3064_v42, %v3050_v41  ;;  %v3061_v25 = vmul.f32 %v3045_v16, %v3045_v16 }
 0x72a   :  { %v3062_v55 = vmul.f32 %v3046_v8, %v3046_v8 }
 0x72b   :  { %v3066_v20 = vadd.f32 %v3065_v34, %v3051_v50 }
 0x72d   :  { %v3067_v39 = vadd.f32 %v3066_v20, %v3052_v0 }
 0x72f   :  { %v3068_v54 = vadd.f32 %v3067_v39, %v3053_v7 }
 0x731   :  { %v3069_v21 = vadd.f32 %v3068_v54, %v3054_v12 }
 0x733   :  { %v3070_v49 = vadd.f32 %v3069_v21, %v3055_v22 }
 0x735   :  { %v3071_v27 = vadd.f32 %v3070_v49, %v3056_v26 }
 0x737   :  { %v3072_v36 = vadd.f32 %v3071_v27, %v3057_v51 }
 0x739   :  { %v3073_v59 = vadd.f32 %v3072_v36, %v3058_v58 }
 0x73b   :  { %v3074_v30 = vadd.f32 %v3073_v59, %v3059_v1 }
 0x73d   :  { %v3075_v9 = vadd.f32 %v3074_v30, %v3060_v2 }
 0x73f   :  { %v3076_v4 = vadd.f32 %v3075_v9, %v3061_v25 }
 0x741   :  { %v3077_v45 = vadd.f32 %v3076_v4, %v3062_v55 }
 0x743   :  { %v3078_v47 = vrot.slane %v3077_v45, 4 }
 0x745   :  { %v3079_v56 = vadd.f32 %v3078_v47, %v3077_v45 }
 0x747   :  { %v3080_v63 = vrot.slane %v3079_v56, 2 }
 0x749   :  { %v3081_v31 = vadd.f32 %v3080_v63, %v3079_v56 }
 0x74b   :  { %v3082_v48 = vrot.slane %v3081_v31, 1 }
 0x74d   :  { %v3083_v44 = vadd.f32 %v3082_v48, %v3081_v31 }
 0x74f   :  { %v3084_v14 = vmul.f32 0.0078125, %v3083_v44 }
 0x751   :  { %v3085_v62 = vadd.f32 1e-05, %v3084_v14 }
 0x753   :  { %4130 = vrsqrt.f32 %v3085_v62 }
 0x760   :  { %v4131_v28 = vpop.eup %4130 }
 0x761   :  { %v3087_v57 = vmul.f32 %v4131_v28, %v3031_v38  ;;  %v3088_v3 = vmul.f32 %v4131_v28, %v3032_v61  ;;  %v3089_v33 = vmul.f32 %v4131_v28, %v3033_v52  ;;  %v3090_v46 = vmul.f32 %v4131_v28, %v3034_v5 }
 0x762   :  { %v3091_v17 = vmul.f32 %v4131_v28, %v3035_v24  ;;  %v3092_v19 = vmul.f32 %v4131_v28, %v3036_v10  ;;  %v3093_v40 = vmul.f32 %v4131_v28, %v3037_v23  ;;  %v3094_v6 = vmul.f32 %v4131_v28, %v3038_v11 }
 0x763   :  { %v3095_v15 = vmul.f32 %v4131_v28, %v3039_v18  ;;  %v3096_v32 = vmul.f32 %v4131_v28, %v3040_v29  ;;  %v3097_v35 = vmul.f32 %v4131_v28, %v3041_v37  ;;  %v3098_v43 = vmul.f32 %v4131_v28, %v3042_v60  ;;  %3103 = vst [vmem:[#allocation13] sm:$0xff] %v3087_v57 }
 0x764   :  { %3104 = vst [vmem:[#allocation13 + $0x8] sm:$0xff] %v3088_v3  ;;  %3105 = vst [vmem:[#allocation13 + $0x10] sm:$0xff] %v3089_v33  ;;  %v3099_v41 = vmul.f32 %v4131_v28, %v3043_v13  ;;  %v3100_v42 = vmul.f32 %v4131_v28, %v3044_v53  ;;  %v3101_v38 = vmul.f32 %v4131_v28, %v3045_v16 }
 0x765   :  { %3106 = vst [vmem:[#allocation13 + $0x18] sm:$0xff] %v3090_v46  ;;  %v3102_v61 = vmul.f32 %v4131_v28, %v3046_v8  ;;  %3107 = vst [vmem:[#allocation13 + $0x20] sm:$0xff] %v3091_v17 }
 0x766   :  { %3108 = vst [vmem:[#allocation13 + $0x28] sm:$0xff] %v3092_v19  ;;  %3109 = vst [vmem:[#allocation13 + $0x30] sm:$0xff] %v3093_v40 }
 0x767   :  { %3110 = vst [vmem:[#allocation13 + $0x38] sm:$0xff] %v3094_v6  ;;  %3111 = vst [vmem:[#allocation13 + $0x40] sm:$0xff] %v3095_v15 }
 0x768   :  { %3112 = vst [vmem:[#allocation13 + $0x48] sm:$0xff] %v3096_v32  ;;  %3113 = vst [vmem:[#allocation13 + $0x50] sm:$0xff] %v3097_v35 }
 0x769   :  { %3114 = vst [vmem:[#allocation13 + $0x58] sm:$0xff] %v3098_v43  ;;  %3115 = vst [vmem:[#allocation13 + $0x60] sm:$0xff] %v3099_v41 }
 0x76a   :  { %3116 = vst [vmem:[#allocation13 + $0x68] sm:$0xff] %v3100_v42  ;;  %3117 = vst [vmem:[#allocation13 + $0x70] sm:$0xff] %v3101_v38 }
 0x76b   :  { %3118 = vst [vmem:[#allocation13 + $0x78] sm:$0xff] %v3102_v61 }
 0x76c   :  { %4279 = shalt.err (!%p4276_p6)
}
 0x76d   :  { %3130 = dma.vmem_to_hbm [thread:$0]  %s3125_s21, 2048, %s5029_s8, [#allocation4], %s4299_s30, %s4299_s30, %s4300_s9  }
 0x76e   :  { %4296 = dma.done.wait [#allocation4], 2048  }
 0x76f   :  { %4297 = vsyncadd [#allocation4], 4294965248 }
 0x770   :  { %3134 = vsyncpa [#allocation3], 1 }
 0x771   :  { %3135 = vsyncpa [#allocation6], 1 }
 0x772   :  { %3136 = vsyncpa [#allocation9], 1 }
 0x773   :  { %3137 = vsyncpa [#allocation12], 1 }
 0x774   :  { %3138 = vsyncpa [#allocation4], 1 }

</bundles_post_ra>
